<compile_context>
chip_gen: v6e
topology: v6e:2x2x1
jax: 0.10.0
libtpu: 0.0.40
codegen_flags: <defaults>
</compile_context>

<pallas_src>
import functools

import jax
import jax.numpy as jnp
import numpy as np
from jax.experimental import pallas as pl
from jax.experimental.pallas import tpu as pltpu


def _round_up(x, m):
    return ((x + m - 1) // m) * m


def _pad2d(x, rows, cols):
    return jnp.pad(x, ((0, rows - x.shape[0]), (0, cols - x.shape[1])))


def _compgcn_kernel(
    # scalar prefetch (SMEM)
    src_ref, tgt_ref, relf_ref,
    # inputs (whole arrays, single-buffered VMEM residents)
    wgt_ref,                        # (E_pad, 1)  f32 symmetric edge weights (0 on padding)
    pe_f_ref, pe_b_ref,             # (N_pad, D_pad)  x_e @ w_fwd / x_e @ w_bwd
    pr_f_ref, pr_b_ref,             # (R2_pad, D_pad) x_r @ w_fwd / x_r @ w_bwd
    base_ref,                       # (N_pad, D_pad)  (x_e - self_loop) @ w_loop
    bias_ref, gamma_ref, beta_ref,  # (1, D_pad)
    # output
    out_ref,                        # (N_pad, D_pad)
    # scratch
    acc_f_ref, acc_b_ref,           # (N_pad, D_pad) f32 dual accumulators
    gs_ref, gt_ref, grf_ref, grb_ref,   # (EB, D_pad) gather staging buffers
    *, num_valid_entities, num_edge_batches, edge_batch, row_block,
):
    acc_f_ref[...] = jnp.zeros_like(acc_f_ref)
    acc_b_ref[...] = jnp.zeros_like(acc_b_ref)

    def edge_body(b, carry):
        e0 = pl.multiple_of(b * edge_batch, edge_batch)
        # Gather edge_batch rows per direction into staging buffers so the compose +
        # edge-weight step runs on full (EB, D_pad) vregs (not 1-sublane (1, D) ops).
        for i in range(edge_batch):
            s = src_ref[e0 + i]
            t = tgt_ref[e0 + i]
            rf = relf_ref[e0 + i]
            gs_ref[pl.ds(i, 1), :] = pe_f_ref[pl.ds(s, 1), :]
            grf_ref[pl.ds(i, 1), :] = pr_f_ref[pl.ds(rf, 1), :]
            gt_ref[pl.ds(i, 1), :] = pe_b_ref[pl.ds(t, 1), :]
            grb_ref[pl.ds(i, 1), :] = pr_b_ref[pl.ds(rf + 1, 1), :]
        # Padded edges carry weight 0.0 and index 0 -> contribute nothing (inputs are
        # finite, coming from dense matmuls, so 0 * x is exactly 0).
        w = wgt_ref[pl.ds(e0, edge_batch), :]                 # (EB, 1)
        mf = (gs_ref[...] - grf_ref[...]) * w                 # phi = subtraction
        mb = (gt_ref[...] - grb_ref[...]) * w
        # Scatter-add: forward messages into the target row, inverse messages into the
        # source row.  Separate accumulators keep the two RMW chains independent.
        for i in range(edge_batch):
            s = src_ref[e0 + i]
            t = tgt_ref[e0 + i]
            acc_f_ref[pl.ds(t, 1), :] = acc_f_ref[pl.ds(t, 1), :] + mf[i:i + 1, :]
            acc_b_ref[pl.ds(s, 1), :] = acc_b_ref[pl.ds(s, 1), :] + mb[i:i + 1, :]
        return carry

    jax.lax.fori_loop(0, num_edge_batches, edge_body, 0)
    # TODO(synk): dropout on the aggregated messages is identity for the default p=0.0.
    # TODO(synk): on v7x, partition edge batches across the two TensorCores (core_map)
    #             with per-core accumulator row halves for ~2x on the edge loop.

    # Finalize: x = (loop + fwd + bwd)/3 + bias, then BatchNorm1d (training-mode batch
    # statistics, biased variance, eps=1e-5) over the valid entity rows only, tiled over
    # row slabs so no full (N_pad, D_pad) temporary is materialized.
    inv3 = 1.0 / 3.0
    inv_n = 1.0 / float(num_valid_entities)
    d_pad = out_ref.shape[1]
    n_row_blocks = out_ref.shape[0] // row_block

    def pass1(rb, carry):
        sum_c, sumsq_c = carry
        r0 = pl.multiple_of(rb * row_block, row_block)
        x = (base_ref[pl.ds(r0, row_block), :]
             + acc_f_ref[pl.ds(r0, row_block), :]
             + acc_b_ref[pl.ds(r0, row_block), :]) * inv3 + bias_ref[...]
        out_ref[pl.ds(r0, row_block), :] = x
        rows = jax.lax.broadcasted_iota(jnp.int32, (row_block, 1), 0) + r0
        xm = x * (rows < num_valid_entities).astype(jnp.float32)
        return (sum_c + jnp.sum(xm, axis=0, keepdims=True),
                sumsq_c + jnp.sum(xm * x, axis=0, keepdims=True))

    zeros_row = jnp.zeros((1, d_pad), jnp.float32)
    sum_x, sum_xx = jax.lax.fori_loop(0, n_row_blocks, pass1, (zeros_row, zeros_row))
    mean = sum_x * inv_n
    var = sum_xx * inv_n - mean * mean
    scale = gamma_ref[...] * jax.lax.rsqrt(var + 1e-5)
    shift = beta_ref[...] - mean * scale

    def pass2(rb, carry):
        r0 = pl.multiple_of(rb * row_block, row_block)
        out_ref[pl.ds(r0, row_block), :] = out_ref[pl.ds(r0, row_block), :] * scale + shift
        return carry

    jax.lax.fori_loop(0, n_row_blocks, pass2, 0)
    # activation = Identity


def compgcn_forward(x_e, x_r, edge_index, edge_type, params, *,
                    edge_batch=8, row_block=256):
    n, _ = x_e.shape
    r2 = x_r.shape[0]
    d_out = params["w_loop"].shape[1]
    e = edge_index.shape[1]
    f32 = jnp.float32

    src = edge_index[0].astype(jnp.int32)
    tgt = edge_index[1].astype(jnp.int32)
    rel_f = (2 * edge_type).astype(jnp.int32)

    # Symmetric edge weights from *global* degrees; the flipped edge has the same weight.
    deg_out = jnp.zeros((n,), f32).at[src].add(1.0)
    deg_in = jnp.zeros((n,), f32).at[tgt].add(1.0)
    wgt = jax.lax.rsqrt(deg_out[src] * deg_in[tgt])

    # Fused projections (one entity matmul, one relation matmul) — all dense work is
    # hoisted out of the edge dimension and out of the kernel.
    w_ent = jnp.concatenate([params["w_fwd"], params["w_bwd"], params["w_loop"]], axis=1)
    pe_all = x_e @ w_ent
    pe_f, pe_b = pe_all[:, :d_out], pe_all[:, d_out:2 * d_out]
    base = pe_all[:, 2 * d_out:] - params["self_loop"] @ params["w_loop"]

    w_rel_all = jnp.concatenate([params["w_fwd"], params["w_bwd"], params["w_rel_t"]], axis=1)
    pr_all = x_r @ w_rel_all
    pr_f, pr_b = pr_all[:, :d_out], pr_all[:, d_out:2 * d_out]
    x_r_out = pr_all[:, 2 * d_out:]       # relation update is independent of the kernel

    # Padding: lanes -> multiple of 128, rows -> multiple of 8 / the BN row slab.
    d_pad = _round_up(d_out, 128)
    n_pad8 = _round_up(n, 8)
    rblk = min(row_block, n_pad8)
    n_pad = _round_up(n_pad8, rblk)
    r2_pad = max(8, _round_up(r2, 8))

    pe_f = _pad2d(pe_f, n_pad, d_pad)
    pe_b = _pad2d(pe_b, n_pad, d_pad)
    base = _pad2d(base, n_pad, d_pad)
    pr_f = _pad2d(pr_f, r2_pad, d_pad)
    pr_b = _pad2d(pr_b, r2_pad, d_pad)
    bias = _pad2d(params["bias"], 1, d_pad)
    gamma = _pad2d(params["gamma"], 1, d_pad)
    beta = _pad2d(params["beta"], 1, d_pad)

    # Edge padding: padded edges use index 0 / weight 0 -> contribute nothing.
    n_batches = -(-e // edge_batch) if e > 0 else 0
    e_pad = max(edge_batch, n_batches * edge_batch)

    def pad_idx(v):
        return jnp.pad(v, (0, e_pad - e))

    src_p, tgt_p, relf_p = pad_idx(src), pad_idx(tgt), pad_idx(rel_f)
    wgt_p = jnp.pad(wgt, (0, e_pad - e)).reshape(e_pad, 1)

    kernel = functools.partial(
        _compgcn_kernel,
        num_valid_entities=n, num_edge_batches=n_batches,
        edge_batch=edge_batch, row_block=rblk)

    def vmem_full():
        # Whole-array, single-buffered VMEM residency: the block index never changes,
        # so default double-buffering would only double the VMEM footprint.
        return pl.BlockSpec(memory_space=pltpu.MemorySpace.VMEM)

    grid_spec = pltpu.PrefetchScalarGridSpec(
        num_scalar_prefetch=3,                    # src, tgt, rel_fwd indices -> SMEM
        grid=(1,),                                # edges loop in-kernel: no grid-step overhead
        in_specs=[vmem_full() for _ in range(9)],
        out_specs=vmem_full(),
        scratch_shapes=[
            pltpu.VMEM((n_pad, d_pad), jnp.float32),        # acc_fwd
            pltpu.VMEM((n_pad, d_pad), jnp.float32),        # acc_bwd
            pltpu.VMEM((edge_batch, d_pad), jnp.float32),   # gather: source rows (fwd)
            pltpu.VMEM((edge_batch, d_pad), jnp.float32),   # gather: target rows (bwd)
            pltpu.VMEM((edge_batch, d_pad), jnp.float32),   # gather: fwd relation rows
            pltpu.VMEM((edge_batch, d_pad), jnp.float32),   # gather: bwd relation rows
        ],
    )

    # Explicit VMEM budget (review: essential on v7x's 64 MiB physical / 32 MiB default).
    resident_bytes = 4 * (6 * n_pad * d_pad + 2 * r2_pad * d_pad
                          + (4 * edge_batch + 3) * d_pad
                          + _round_up(e_pad, 8) * 128)
    vmem_limit = int(min(max(resident_bytes + (8 << 20), 32 << 20), 100 << 20))

    x_e_out = pl.pallas_call(
        kernel,
        out_shape=jax.ShapeDtypeStruct((n_pad, d_pad), jnp.float32),
        grid_spec=grid_spec,
        compiler_params=pltpu.CompilerParams(
            dimension_semantics=("arbitrary",),
            vmem_limit_bytes=vmem_limit,
        ),
    )(src_p, tgt_p, relf_p,
      wgt_p, pe_f, pe_b, pr_f, pr_b, base, bias, gamma, beta)

    return x_e_out[:n, :d_out], x_r_out


def compgcn_reference(x_e, x_r, edge_index, edge_type, params):
    """Pure-JAX reference matching the PyTorch forward semantics."""
    n = x_e.shape[0]
    d_out = params["w_loop"].shape[1]

    def message(src, tgt, rel, w):
        m = (x_e[src] - x_r[rel]) @ w
        deg_out = jnp.zeros((n,), jnp.float32).at[src].add(1.0)
        deg_in = jnp.zeros((n,), jnp.float32).at[tgt].add(1.0)
        wgt = 1.0 / jnp.sqrt(deg_out[src] * deg_in[tgt])
        m = m * wgt[:, None]
        return jnp.zeros((n, d_out), jnp.float32).at[tgt].add(m)

    src, tgt = edge_index[0], edge_index[1]
    loop = (x_e - params["self_loop"]) @ params["w_loop"]
    fwd = message(src, tgt, 2 * edge_type, params["w_fwd"])
    bwd = message(tgt, src, 2 * edge_type + 1, params["w_bwd"])
    x = (loop + fwd + bwd) / 3.0
    x = x + params["bias"]
    mean = jnp.mean(x, axis=0, keepdims=True)
    var = jnp.mean((x - mean) ** 2, axis=0, keepdims=True)
    x = (x - mean) / jnp.sqrt(var + 1e-5) * params["gamma"] + params["beta"]
    return x, x_r @ params["w_rel_t"]


if __name__ == "__main__":
    N, D_IN, D_OUT, R, E = 32, 16, 16, 4, 24

    key = jax.random.PRNGKey(0)
    keys = jax.random.split(key, 10)

    x_e = jax.random.normal(keys[0], (N, D_IN), jnp.float32)
    x_r = jax.random.normal(keys[1], (2 * R, D_IN), jnp.float32)
    edge_index = jax.random.randint(keys[2], (2, E), 0, N, jnp.int32)
    edge_type = jax.random.randint(keys[3], (E,), 0, R, jnp.int32)

    def xavier(k, shape):
        bound = float(np.sqrt(6.0 / (shape[0] + shape[1])))
        return jax.random.uniform(k, shape, jnp.float32, -bound, bound)

    lin_bound = float(np.sqrt(1.0 / D_IN))
    params = {
        "w_loop": xavier(keys[4], (D_IN, D_OUT)),
        "w_fwd": xavier(keys[5], (D_IN, D_OUT)),
        "w_bwd": xavier(keys[6], (D_IN, D_OUT)),
        "self_loop": xavier(keys[7], (1, D_IN)),
        # nn.Linear(D_IN, D_OUT, bias=False) weight, stored pre-transposed
        "w_rel_t": jax.random.uniform(keys[8], (D_IN, D_OUT), jnp.float32,
                                      -lin_bound, lin_bound),
        "bias": jnp.zeros((1, D_OUT), jnp.float32),     # pykeen Bias resets to zeros
        "gamma": jnp.ones((1, D_OUT), jnp.float32),     # fresh BatchNorm1d
        "beta": jnp.zeros((1, D_OUT), jnp.float32),
    }

    forward = jax.jit(compgcn_forward)
    xe_out, xr_out = forward(x_e, x_r, edge_index, edge_type, params)
    jax.block_until_ready((xe_out, xr_out))

    xe_ref, xr_ref = compgcn_reference(x_e, x_r, edge_index, edge_type, params)
    np.testing.assert_allclose(np.asarray(xe_out), np.asarray(xe_ref), rtol=1e-3, atol=1e-3)
    np.testing.assert_allclose(np.asarray(xr_out), np.asarray(xr_ref), rtol=1e-3, atol=1e-3)

    print("KERNEL_OK")
</pallas_src>

<mosaic_0001>
module attributes {stable_mosaic.version = 11 : i64} {
  func.func private @main(%arg0: i32) attributes {dimension_semantics = [#tpu.dimension_semantics<core_parallel>], iteration_bounds = array<i64: 2>, tpu.core_type = #tpu.core_type<sc_scalar_subcore>, window_params = []} {
    return
  }
}

module attributes {stable_mosaic.version = 11 : i64} {
  func.func private @main(%arg0: i32) attributes {dimension_semantics = [#tpu.dimension_semantics<core_parallel>], iteration_bounds = array<i64: 2>, tpu.core_type = #tpu.core_type<sc_scalar_subcore>, window_params = []} {
    return
  }
}

module attributes {stable_mosaic.version = 11 : i64} {
  func.func @_compgcn_kernel(%arg0: i32, %arg1: memref<24xi32, #tpu.memory_space<smem>>, %arg2: memref<24xi32, #tpu.memory_space<smem>>, %arg3: memref<24xi32, #tpu.memory_space<smem>>, %arg4: memref<24x1xf32, #tpu.memory_space<vmem>>, %arg5: memref<32x128xf32, #tpu.memory_space<vmem>>, %arg6: memref<32x128xf32, #tpu.memory_space<vmem>>, %arg7: memref<8x128xf32, #tpu.memory_space<vmem>>, %arg8: memref<8x128xf32, #tpu.memory_space<vmem>>, %arg9: memref<32x128xf32, #tpu.memory_space<vmem>>, %arg10: memref<1x128xf32, #tpu.memory_space<vmem>>, %arg11: memref<1x128xf32, #tpu.memory_space<vmem>>, %arg12: memref<1x128xf32, #tpu.memory_space<vmem>>, %arg13: memref<32x128xf32, #tpu.memory_space<vmem>>, %arg14: memref<32x128xf32, #tpu.memory_space<vmem>>, %arg15: memref<32x128xf32, #tpu.memory_space<vmem>>, %arg16: memref<8x128xf32, #tpu.memory_space<vmem>>, %arg17: memref<8x128xf32, #tpu.memory_space<vmem>>, %arg18: memref<8x128xf32, #tpu.memory_space<vmem>>, %arg19: memref<8x128xf32, #tpu.memory_space<vmem>>) attributes {dimension_semantics = [#tpu.dimension_semantics<arbitrary>], iteration_bounds = array<i64: 1>, scalar_prefetch = 3 : i64, scratch_operands = 6 : i64, tpu.core_type = #tpu.core_type<tc>, window_params = [{pipeline_mode = #tpu.pipeline_mode<synchronous>, transform_indices = @transform_0, window_bounds = array<i64: 24, 1>}, {pipeline_mode = #tpu.pipeline_mode<synchronous>, transform_indices = @transform_1, window_bounds = array<i64: 32, 128>}, {pipeline_mode = #tpu.pipeline_mode<synchronous>, transform_indices = @transform_2, window_bounds = array<i64: 32, 128>}, {pipeline_mode = #tpu.pipeline_mode<synchronous>, transform_indices = @transform_3, window_bounds = array<i64: 8, 128>}, {pipeline_mode = #tpu.pipeline_mode<synchronous>, transform_indices = @transform_4, window_bounds = array<i64: 8, 128>}, {pipeline_mode = #tpu.pipeline_mode<synchronous>, transform_indices = @transform_5, window_bounds = array<i64: 32, 128>}, {pipeline_mode = #tpu.pipeline_mode<synchronous>, transform_indices = @transform_6, window_bounds = array<i64: 1, 128>}, {pipeline_mode = #tpu.pipeline_mode<synchronous>, transform_indices = @transform_7, window_bounds = array<i64: 1, 128>}, {pipeline_mode = #tpu.pipeline_mode<synchronous>, transform_indices = @transform_8, window_bounds = array<i64: 1, 128>}, {pipeline_mode = #tpu.pipeline_mode<synchronous>, transform_indices = @transform_9, window_bounds = array<i64: 32, 128>}]} {
    %cst = arith.constant 0.000000e+00 : f32
    %0 = vector.broadcast %cst : f32 to vector<32x128xf32>
    %c0 = arith.constant 0 : index
    %c0_0 = arith.constant 0 : index
    %1 = vector.load %arg14[%c0, %c0_0] : memref<32x128xf32, #tpu.memory_space<vmem>>, vector<32x128xf32>
    tpu.vector_store %arg14[%c0, %c0_0], %0 {strides = array<i32>} : memref<32x128xf32, #tpu.memory_space<vmem>>, vector<32x128xf32>,
    %cst_1 = arith.constant 0.000000e+00 : f32
    %2 = vector.broadcast %cst_1 : f32 to vector<32x128xf32>
    %c0_2 = arith.constant 0 : index
    %c0_3 = arith.constant 0 : index
    %3 = vector.load %arg15[%c0_2, %c0_3] : memref<32x128xf32, #tpu.memory_space<vmem>>, vector<32x128xf32>
    tpu.vector_store %arg15[%c0_2, %c0_3], %2 {strides = array<i32>} : memref<32x128xf32, #tpu.memory_space<vmem>>, vector<32x128xf32>,
    %c0_i32 = arith.constant 0 : i32
    %c3_i32 = arith.constant 3 : i32
    %4 = arith.addi %c0_i32, %c3_i32 : i32
    %c1_i32 = arith.constant 1 : i32
    scf.for %arg20 = %c0_i32 to %4 step %c1_i32  : i32 {
      %c8_i32 = arith.constant 8 : i32
      %63 = arith.muli %arg20, %c8_i32 : i32
      %64 = tpu.assume_multiple %63, 8 : i32
      %c0_i32_30 = arith.constant 0 : i32
      %65 = arith.addi %64, %c0_i32_30 : i32
      %66 = arith.index_cast %65 : i32 to index
      %67 = memref.load %arg1[%66] : memref<24xi32, #tpu.memory_space<smem>>
      %c0_i32_31 = arith.constant 0 : i32
      %68 = arith.addi %64, %c0_i32_31 : i32
      %69 = arith.index_cast %68 : i32 to index
      %70 = memref.load %arg2[%69] : memref<24xi32, #tpu.memory_space<smem>>
      %c0_i32_32 = arith.constant 0 : i32
      %71 = arith.addi %64, %c0_i32_32 : i32
      %72 = arith.index_cast %71 : i32 to index
      %73 = memref.load %arg3[%72] : memref<24xi32, #tpu.memory_space<smem>>
      %74 = arith.index_cast %67 : i32 to index
      %c0_33 = arith.constant 0 : index
      %75 = vector.load %arg5[%74, %c0_33] : memref<32x128xf32, #tpu.memory_space<vmem>>, vector<1x128xf32>
      %c0_34 = arith.constant 0 : index
      %c0_35 = arith.constant 0 : index
      %76 = vector.load %arg16[%c0_34, %c0_35] : memref<8x128xf32, #tpu.memory_space<vmem>>, vector<1x128xf32>
      tpu.vector_store %arg16[%c0_34, %c0_35], %75 {strides = array<i32>} : memref<8x128xf32, #tpu.memory_space<vmem>>, vector<1x128xf32>,
      %77 = arith.index_cast %73 : i32 to index
      %c0_36 = arith.constant 0 : index
      %78 = vector.load %arg7[%77, %c0_36] : memref<8x128xf32, #tpu.memory_space<vmem>>, vector<1x128xf32>
      %c0_37 = arith.constant 0 : index
      %c0_38 = arith.constant 0 : index
      %79 = vector.load %arg18[%c0_37, %c0_38] : memref<8x128xf32, #tpu.memory_space<vmem>>, vector<1x128xf32>
      tpu.vector_store %arg18[%c0_37, %c0_38], %78 {strides = array<i32>} : memref<8x128xf32, #tpu.memory_space<vmem>>, vector<1x128xf32>,
      %80 = arith.index_cast %70 : i32 to index
      %c0_39 = arith.constant 0 : index
      %81 = vector.load %arg6[%80, %c0_39] : memref<32x128xf32, #tpu.memory_space<vmem>>, vector<1x128xf32>
      %c0_40 = arith.constant 0 : index
      %c0_41 = arith.constant 0 : index
      %82 = vector.load %arg17[%c0_40, %c0_41] : memref<8x128xf32, #tpu.memory_space<vmem>>, vector<1x128xf32>
      tpu.vector_store %arg17[%c0_40, %c0_41], %81 {strides = array<i32>} : memref<8x128xf32, #tpu.memory_space<vmem>>, vector<1x128xf32>,
      %c1_i32_42 = arith.constant 1 : i32
      %83 = arith.addi %73, %c1_i32_42 : i32
      %84 = arith.index_cast %83 : i32 to index
      %c0_43 = arith.constant 0 : index
      %85 = vector.load %arg8[%84, %c0_43] : memref<8x128xf32, #tpu.memory_space<vmem>>, vector<1x128xf32>
      %c0_44 = arith.constant 0 : index
      %c0_45 = arith.constant 0 : index
      %86 = vector.load %arg19[%c0_44, %c0_45] : memref<8x128xf32, #tpu.memory_space<vmem>>, vector<1x128xf32>
      tpu.vector_store %arg19[%c0_44, %c0_45], %85 {strides = array<i32>} : memref<8x128xf32, #tpu.memory_space<vmem>>, vector<1x128xf32>,
      %c1_i32_46 = arith.constant 1 : i32
      %87 = arith.addi %64, %c1_i32_46 : i32
      %88 = arith.index_cast %87 : i32 to index
      %89 = memref.load %arg1[%88] : memref<24xi32, #tpu.memory_space<smem>>
      %c1_i32_47 = arith.constant 1 : i32
      %90 = arith.addi %64, %c1_i32_47 : i32
      %91 = arith.index_cast %90 : i32 to index
      %92 = memref.load %arg2[%91] : memref<24xi32, #tpu.memory_space<smem>>
      %c1_i32_48 = arith.constant 1 : i32
      %93 = arith.addi %64, %c1_i32_48 : i32
      %94 = arith.index_cast %93 : i32 to index
      %95 = memref.load %arg3[%94] : memref<24xi32, #tpu.memory_space<smem>>
      %96 = arith.index_cast %89 : i32 to index
      %c0_49 = arith.constant 0 : index
      %97 = vector.load %arg5[%96, %c0_49] : memref<32x128xf32, #tpu.memory_space<vmem>>, vector<1x128xf32>
      %c1 = arith.constant 1 : index
      %c0_50 = arith.constant 0 : index
      %98 = vector.load %arg16[%c1, %c0_50] : memref<8x128xf32, #tpu.memory_space<vmem>>, vector<1x128xf32>
      tpu.vector_store %arg16[%c1, %c0_50], %97 {strides = array<i32>} : memref<8x128xf32, #tpu.memory_space<vmem>>, vector<1x128xf32>,
      %99 = arith.index_cast %95 : i32 to index
      %c0_51 = arith.constant 0 : index
      %100 = vector.load %arg7[%99, %c0_51] : memref<8x128xf32, #tpu.memory_space<vmem>>, vector<1x128xf32>
      %c1_52 = arith.constant 1 : index
      %c0_53 = arith.constant 0 : index
      %101 = vector.load %arg18[%c1_52, %c0_53] : memref<8x128xf32, #tpu.memory_space<vmem>>, vector<1x128xf32>
      tpu.vector_store %arg18[%c1_52, %c0_53], %100 {strides = array<i32>} : memref<8x128xf32, #tpu.memory_space<vmem>>, vector<1x128xf32>,
      %102 = arith.index_cast %92 : i32 to index
      %c0_54 = arith.constant 0 : index
      %103 = vector.load %arg6[%102, %c0_54] : memref<32x128xf32, #tpu.memory_space<vmem>>, vector<1x128xf32>
      %c1_55 = arith.constant 1 : index
      %c0_56 = arith.constant 0 : index
      %104 = vector.load %arg17[%c1_55, %c0_56] : memref<8x128xf32, #tpu.memory_space<vmem>>, vector<1x128xf32>
      tpu.vector_store %arg17[%c1_55, %c0_56], %103 {strides = array<i32>} : memref<8x128xf32, #tpu.memory_space<vmem>>, vector<1x128xf32>,
      %c1_i32_57 = arith.constant 1 : i32
      %105 = arith.addi %95, %c1_i32_57 : i32
      %106 = arith.index_cast %105 : i32 to index
      %c0_58 = arith.constant 0 : index
      %107 = vector.load %arg8[%106, %c0_58] : memref<8x128xf32, #tpu.memory_space<vmem>>, vector<1x128xf32>
      %c1_59 = arith.constant 1 : index
      %c0_60 = arith.constant 0 : index
      %108 = vector.load %arg19[%c1_59, %c0_60] : memref<8x128xf32, #tpu.memory_space<vmem>>, vector<1x128xf32>
      tpu.vector_store %arg19[%c1_59, %c0_60], %107 {strides = array<i32>} : memref<8x128xf32, #tpu.memory_space<vmem>>, vector<1x128xf32>,
      %c2_i32 = arith.constant 2 : i32
      %109 = arith.addi %64, %c2_i32 : i32
      %110 = arith.index_cast %109 : i32 to index
      %111 = memref.load %arg1[%110] : memref<24xi32, #tpu.memory_space<smem>>
      %c2_i32_61 = arith.constant 2 : i32
      %112 = arith.addi %64, %c2_i32_61 : i32
      %113 = arith.index_cast %112 : i32 to index
      %114 = memref.load %arg2[%113] : memref<24xi32, #tpu.memory_space<smem>>
      %c2_i32_62 = arith.constant 2 : i32
      %115 = arith.addi %64, %c2_i32_62 : i32
      %116 = arith.index_cast %115 : i32 to index
      %117 = memref.load %arg3[%116] : memref<24xi32, #tpu.memory_space<smem>>
      %118 = arith.index_cast %111 : i32 to index
      %c0_63 = arith.constant 0 : index
      %119 = vector.load %arg5[%118, %c0_63] : memref<32x128xf32, #tpu.memory_space<vmem>>, vector<1x128xf32>
      %c2 = arith.constant 2 : index
      %c0_64 = arith.constant 0 : index
      %120 = vector.load %arg16[%c2, %c0_64] : memref<8x128xf32, #tpu.memory_space<vmem>>, vector<1x128xf32>
      tpu.vector_store %arg16[%c2, %c0_64], %119 {strides = array<i32>} : memref<8x128xf32, #tpu.memory_space<vmem>>, vector<1x128xf32>,
      %121 = arith.index_cast %117 : i32 to index
      %c0_65 = arith.constant 0 : index
      %122 = vector.load %arg7[%121, %c0_65] : memref<8x128xf32, #tpu.memory_space<vmem>>, vector<1x128xf32>
      %c2_66 = arith.constant 2 : index
      %c0_67 = arith.constant 0 : index
      %123 = vector.load %arg18[%c2_66, %c0_67] : memref<8x128xf32, #tpu.memory_space<vmem>>, vector<1x128xf32>
      tpu.vector_store %arg18[%c2_66, %c0_67], %122 {strides = array<i32>} : memref<8x128xf32, #tpu.memory_space<vmem>>, vector<1x128xf32>,
      %124 = arith.index_cast %114 : i32 to index
      %c0_68 = arith.constant 0 : index
      %125 = vector.load %arg6[%124, %c0_68] : memref<32x128xf32, #tpu.memory_space<vmem>>, vector<1x128xf32>
      %c2_69 = arith.constant 2 : index
      %c0_70 = arith.constant 0 : index
      %126 = vector.load %arg17[%c2_69, %c0_70] : memref<8x128xf32, #tpu.memory_space<vmem>>, vector<1x128xf32>
      tpu.vector_store %arg17[%c2_69, %c0_70], %125 {strides = array<i32>} : memref<8x128xf32, #tpu.memory_space<vmem>>, vector<1x128xf32>,
      %c1_i32_71 = arith.constant 1 : i32
      %127 = arith.addi %117, %c1_i32_71 : i32
      %128 = arith.index_cast %127 : i32 to index
      %c0_72 = arith.constant 0 : index
      %129 = vector.load %arg8[%128, %c0_72] : memref<8x128xf32, #tpu.memory_space<vmem>>, vector<1x128xf32>
      %c2_73 = arith.constant 2 : index
      %c0_74 = arith.constant 0 : index
      %130 = vector.load %arg19[%c2_73, %c0_74] : memref<8x128xf32, #tpu.memory_space<vmem>>, vector<1x128xf32>
      tpu.vector_store %arg19[%c2_73, %c0_74], %129 {strides = array<i32>} : memref<8x128xf32, #tpu.memory_space<vmem>>, vector<1x128xf32>,
      %c3_i32_75 = arith.constant 3 : i32
      %131 = arith.addi %64, %c3_i32_75 : i32
      %132 = arith.index_cast %131 : i32 to index
      %133 = memref.load %arg1[%132] : memref<24xi32, #tpu.memory_space<smem>>
      %c3_i32_76 = arith.constant 3 : i32
      %134 = arith.addi %64, %c3_i32_76 : i32
      %135 = arith.index_cast %134 : i32 to index
      %136 = memref.load %arg2[%135] : memref<24xi32, #tpu.memory_space<smem>>
      %c3_i32_77 = arith.constant 3 : i32
      %137 = arith.addi %64, %c3_i32_77 : i32
      %138 = arith.index_cast %137 : i32 to index
      %139 = memref.load %arg3[%138] : memref<24xi32, #tpu.memory_space<smem>>
      %140 = arith.index_cast %133 : i32 to index
      %c0_78 = arith.constant 0 : index
      %141 = vector.load %arg5[%140, %c0_78] : memref<32x128xf32, #tpu.memory_space<vmem>>, vector<1x128xf32>
      %c3 = arith.constant 3 : index
      %c0_79 = arith.constant 0 : index
      %142 = vector.load %arg16[%c3, %c0_79] : memref<8x128xf32, #tpu.memory_space<vmem>>, vector<1x128xf32>
      tpu.vector_store %arg16[%c3, %c0_79], %141 {strides = array<i32>} : memref<8x128xf32, #tpu.memory_space<vmem>>, vector<1x128xf32>,
      %143 = arith.index_cast %139 : i32 to index
      %c0_80 = arith.constant 0 : index
      %144 = vector.load %arg7[%143, %c0_80] : memref<8x128xf32, #tpu.memory_space<vmem>>, vector<1x128xf32>
      %c3_81 = arith.constant 3 : index
      %c0_82 = arith.constant 0 : index
      %145 = vector.load %arg18[%c3_81, %c0_82] : memref<8x128xf32, #tpu.memory_space<vmem>>, vector<1x128xf32>
      tpu.vector_store %arg18[%c3_81, %c0_82], %144 {strides = array<i32>} : memref<8x128xf32, #tpu.memory_space<vmem>>, vector<1x128xf32>,
      %146 = arith.index_cast %136 : i32 to index
      %c0_83 = arith.constant 0 : index
      %147 = vector.load %arg6[%146, %c0_83] : memref<32x128xf32, #tpu.memory_space<vmem>>, vector<1x128xf32>
      %c3_84 = arith.constant 3 : index
      %c0_85 = arith.constant 0 : index
      %148 = vector.load %arg17[%c3_84, %c0_85] : memref<8x128xf32, #tpu.memory_space<vmem>>, vector<1x128xf32>
      tpu.vector_store %arg17[%c3_84, %c0_85], %147 {strides = array<i32>} : memref<8x128xf32, #tpu.memory_space<vmem>>, vector<1x128xf32>,
      %c1_i32_86 = arith.constant 1 : i32
      %149 = arith.addi %139, %c1_i32_86 : i32
      %150 = arith.index_cast %149 : i32 to index
      %c0_87 = arith.constant 0 : index
      %151 = vector.load %arg8[%150, %c0_87] : memref<8x128xf32, #tpu.memory_space<vmem>>, vector<1x128xf32>
      %c3_88 = arith.constant 3 : index
      %c0_89 = arith.constant 0 : index
      %152 = vector.load %arg19[%c3_88, %c0_89] : memref<8x128xf32, #tpu.memory_space<vmem>>, vector<1x128xf32>
      tpu.vector_store %arg19[%c3_88, %c0_89], %151 {strides = array<i32>} : memref<8x128xf32, #tpu.memory_space<vmem>>, vector<1x128xf32>,
      %c4_i32 = arith.constant 4 : i32
      %153 = arith.addi %64, %c4_i32 : i32
      %154 = arith.index_cast %153 : i32 to index
      %155 = memref.load %arg1[%154] : memref<24xi32, #tpu.memory_space<smem>>
      %c4_i32_90 = arith.constant 4 : i32
      %156 = arith.addi %64, %c4_i32_90 : i32
      %157 = arith.index_cast %156 : i32 to index
      %158 = memref.load %arg2[%157] : memref<24xi32, #tpu.memory_space<smem>>
      %c4_i32_91 = arith.constant 4 : i32
      %159 = arith.addi %64, %c4_i32_91 : i32
      %160 = arith.index_cast %159 : i32 to index
      %161 = memref.load %arg3[%160] : memref<24xi32, #tpu.memory_space<smem>>
      %162 = arith.index_cast %155 : i32 to index
      %c0_92 = arith.constant 0 : index
      %163 = vector.load %arg5[%162, %c0_92] : memref<32x128xf32, #tpu.memory_space<vmem>>, vector<1x128xf32>
      %c4 = arith.constant 4 : index
      %c0_93 = arith.constant 0 : index
      %164 = vector.load %arg16[%c4, %c0_93] : memref<8x128xf32, #tpu.memory_space<vmem>>, vector<1x128xf32>
      tpu.vector_store %arg16[%c4, %c0_93], %163 {strides = array<i32>} : memref<8x128xf32, #tpu.memory_space<vmem>>, vector<1x128xf32>,
      %165 = arith.index_cast %161 : i32 to index
      %c0_94 = arith.constant 0 : index
      %166 = vector.load %arg7[%165, %c0_94] : memref<8x128xf32, #tpu.memory_space<vmem>>, vector<1x128xf32>
      %c4_95 = arith.constant 4 : index
      %c0_96 = arith.constant 0 : index
      %167 = vector.load %arg18[%c4_95, %c0_96] : memref<8x128xf32, #tpu.memory_space<vmem>>, vector<1x128xf32>
      tpu.vector_store %arg18[%c4_95, %c0_96], %166 {strides = array<i32>} : memref<8x128xf32, #tpu.memory_space<vmem>>, vector<1x128xf32>,
      %168 = arith.index_cast %158 : i32 to index
      %c0_97 = arith.constant 0 : index
      %169 = vector.load %arg6[%168, %c0_97] : memref<32x128xf32, #tpu.memory_space<vmem>>, vector<1x128xf32>
      %c4_98 = arith.constant 4 : index
      %c0_99 = arith.constant 0 : index
      %170 = vector.load %arg17[%c4_98, %c0_99] : memref<8x128xf32, #tpu.memory_space<vmem>>, vector<1x128xf32>
      tpu.vector_store %arg17[%c4_98, %c0_99], %169 {strides = array<i32>} : memref<8x128xf32, #tpu.memory_space<vmem>>, vector<1x128xf32>,
      %c1_i32_100 = arith.constant 1 : i32
      %171 = arith.addi %161, %c1_i32_100 : i32
      %172 = arith.index_cast %171 : i32 to index
      %c0_101 = arith.constant 0 : index
      %173 = vector.load %arg8[%172, %c0_101] : memref<8x128xf32, #tpu.memory_space<vmem>>, vector<1x128xf32>
      %c4_102 = arith.constant 4 : index
      %c0_103 = arith.constant 0 : index
      %174 = vector.load %arg19[%c4_102, %c0_103] : memref<8x128xf32, #tpu.memory_space<vmem>>, vector<1x128xf32>
      tpu.vector_store %arg19[%c4_102, %c0_103], %173 {strides = array<i32>} : memref<8x128xf32, #tpu.memory_space<vmem>>, vector<1x128xf32>,
      %c5_i32 = arith.constant 5 : i32
      %175 = arith.addi %64, %c5_i32 : i32
      %176 = arith.index_cast %175 : i32 to index
      %177 = memref.load %arg1[%176] : memref<24xi32, #tpu.memory_space<smem>>
      %c5_i32_104 = arith.constant 5 : i32
      %178 = arith.addi %64, %c5_i32_104 : i32
      %179 = arith.index_cast %178 : i32 to index
      %180 = memref.load %arg2[%179] : memref<24xi32, #tpu.memory_space<smem>>
      %c5_i32_105 = arith.constant 5 : i32
      %181 = arith.addi %64, %c5_i32_105 : i32
      %182 = arith.index_cast %181 : i32 to index
      %183 = memref.load %arg3[%182] : memref<24xi32, #tpu.memory_space<smem>>
      %184 = arith.index_cast %177 : i32 to index
      %c0_106 = arith.constant 0 : index
      %185 = vector.load %arg5[%184, %c0_106] : memref<32x128xf32, #tpu.memory_space<vmem>>, vector<1x128xf32>
      %c5 = arith.constant 5 : index
      %c0_107 = arith.constant 0 : index
      %186 = vector.load %arg16[%c5, %c0_107] : memref<8x128xf32, #tpu.memory_space<vmem>>, vector<1x128xf32>
      tpu.vector_store %arg16[%c5, %c0_107], %185 {strides = array<i32>} : memref<8x128xf32, #tpu.memory_space<vmem>>, vector<1x128xf32>,
      %187 = arith.index_cast %183 : i32 to index
      %c0_108 = arith.constant 0 : index
      %188 = vector.load %arg7[%187, %c0_108] : memref<8x128xf32, #tpu.memory_space<vmem>>, vector<1x128xf32>
      %c5_109 = arith.constant 5 : index
      %c0_110 = arith.constant 0 : index
      %189 = vector.load %arg18[%c5_109, %c0_110] : memref<8x128xf32, #tpu.memory_space<vmem>>, vector<1x128xf32>
      tpu.vector_store %arg18[%c5_109, %c0_110], %188 {strides = array<i32>} : memref<8x128xf32, #tpu.memory_space<vmem>>, vector<1x128xf32>,
      %190 = arith.index_cast %180 : i32 to index
      %c0_111 = arith.constant 0 : index
      %191 = vector.load %arg6[%190, %c0_111] : memref<32x128xf32, #tpu.memory_space<vmem>>, vector<1x128xf32>
      %c5_112 = arith.constant 5 : index
      %c0_113 = arith.constant 0 : index
      %192 = vector.load %arg17[%c5_112, %c0_113] : memref<8x128xf32, #tpu.memory_space<vmem>>, vector<1x128xf32>
      tpu.vector_store %arg17[%c5_112, %c0_113], %191 {strides = array<i32>} : memref<8x128xf32, #tpu.memory_space<vmem>>, vector<1x128xf32>,
      %c1_i32_114 = arith.constant 1 : i32
      %193 = arith.addi %183, %c1_i32_114 : i32
      %194 = arith.index_cast %193 : i32 to index
      %c0_115 = arith.constant 0 : index
      %195 = vector.load %arg8[%194, %c0_115] : memref<8x128xf32, #tpu.memory_space<vmem>>, vector<1x128xf32>
      %c5_116 = arith.constant 5 : index
      %c0_117 = arith.constant 0 : index
      %196 = vector.load %arg19[%c5_116, %c0_117] : memref<8x128xf32, #tpu.memory_space<vmem>>, vector<1x128xf32>
      tpu.vector_store %arg19[%c5_116, %c0_117], %195 {strides = array<i32>} : memref<8x128xf32, #tpu.memory_space<vmem>>, vector<1x128xf32>,
      %c6_i32 = arith.constant 6 : i32
      %197 = arith.addi %64, %c6_i32 : i32
      %198 = arith.index_cast %197 : i32 to index
      %199 = memref.load %arg1[%198] : memref<24xi32, #tpu.memory_space<smem>>
      %c6_i32_118 = arith.constant 6 : i32
      %200 = arith.addi %64, %c6_i32_118 : i32
      %201 = arith.index_cast %200 : i32 to index
      %202 = memref.load %arg2[%201] : memref<24xi32, #tpu.memory_space<smem>>
      %c6_i32_119 = arith.constant 6 : i32
      %203 = arith.addi %64, %c6_i32_119 : i32
      %204 = arith.index_cast %203 : i32 to index
      %205 = memref.load %arg3[%204] : memref<24xi32, #tpu.memory_space<smem>>
      %206 = arith.index_cast %199 : i32 to index
      %c0_120 = arith.constant 0 : index
      %207 = vector.load %arg5[%206, %c0_120] : memref<32x128xf32, #tpu.memory_space<vmem>>, vector<1x128xf32>
      %c6 = arith.constant 6 : index
      %c0_121 = arith.constant 0 : index
      %208 = vector.load %arg16[%c6, %c0_121] : memref<8x128xf32, #tpu.memory_space<vmem>>, vector<1x128xf32>
      tpu.vector_store %arg16[%c6, %c0_121], %207 {strides = array<i32>} : memref<8x128xf32, #tpu.memory_space<vmem>>, vector<1x128xf32>,
      %209 = arith.index_cast %205 : i32 to index
      %c0_122 = arith.constant 0 : index
      %210 = vector.load %arg7[%209, %c0_122] : memref<8x128xf32, #tpu.memory_space<vmem>>, vector<1x128xf32>
      %c6_123 = arith.constant 6 : index
      %c0_124 = arith.constant 0 : index
      %211 = vector.load %arg18[%c6_123, %c0_124] : memref<8x128xf32, #tpu.memory_space<vmem>>, vector<1x128xf32>
      tpu.vector_store %arg18[%c6_123, %c0_124], %210 {strides = array<i32>} : memref<8x128xf32, #tpu.memory_space<vmem>>, vector<1x128xf32>,
      %212 = arith.index_cast %202 : i32 to index
      %c0_125 = arith.constant 0 : index
      %213 = vector.load %arg6[%212, %c0_125] : memref<32x128xf32, #tpu.memory_space<vmem>>, vector<1x128xf32>
      %c6_126 = arith.constant 6 : index
      %c0_127 = arith.constant 0 : index
      %214 = vector.load %arg17[%c6_126, %c0_127] : memref<8x128xf32, #tpu.memory_space<vmem>>, vector<1x128xf32>
      tpu.vector_store %arg17[%c6_126, %c0_127], %213 {strides = array<i32>} : memref<8x128xf32, #tpu.memory_space<vmem>>, vector<1x128xf32>,
      %c1_i32_128 = arith.constant 1 : i32
      %215 = arith.addi %205, %c1_i32_128 : i32
      %216 = arith.index_cast %215 : i32 to index
      %c0_129 = arith.constant 0 : index
      %217 = vector.load %arg8[%216, %c0_129] : memref<8x128xf32, #tpu.memory_space<vmem>>, vector<1x128xf32>
      %c6_130 = arith.constant 6 : index
      %c0_131 = arith.constant 0 : index
      %218 = vector.load %arg19[%c6_130, %c0_131] : memref<8x128xf32, #tpu.memory_space<vmem>>, vector<1x128xf32>
      tpu.vector_store %arg19[%c6_130, %c0_131], %217 {strides = array<i32>} : memref<8x128xf32, #tpu.memory_space<vmem>>, vector<1x128xf32>,
      %c7_i32 = arith.constant 7 : i32
      %219 = arith.addi %64, %c7_i32 : i32
      %220 = arith.index_cast %219 : i32 to index
      %221 = memref.load %arg1[%220] : memref<24xi32, #tpu.memory_space<smem>>
      %c7_i32_132 = arith.constant 7 : i32
      %222 = arith.addi %64, %c7_i32_132 : i32
      %223 = arith.index_cast %222 : i32 to index
      %224 = memref.load %arg2[%223] : memref<24xi32, #tpu.memory_space<smem>>
      %c7_i32_133 = arith.constant 7 : i32
      %225 = arith.addi %64, %c7_i32_133 : i32
      %226 = arith.index_cast %225 : i32 to index
      %227 = memref.load %arg3[%226] : memref<24xi32, #tpu.memory_space<smem>>
      %228 = arith.index_cast %221 : i32 to index
      %c0_134 = arith.constant 0 : index
      %229 = vector.load %arg5[%228, %c0_134] : memref<32x128xf32, #tpu.memory_space<vmem>>, vector<1x128xf32>
      %c7 = arith.constant 7 : index
      %c0_135 = arith.constant 0 : index
      %230 = vector.load %arg16[%c7, %c0_135] : memref<8x128xf32, #tpu.memory_space<vmem>>, vector<1x128xf32>
      tpu.vector_store %arg16[%c7, %c0_135], %229 {strides = array<i32>} : memref<8x128xf32, #tpu.memory_space<vmem>>, vector<1x128xf32>,
      %231 = arith.index_cast %227 : i32 to index
      %c0_136 = arith.constant 0 : index
      %232 = vector.load %arg7[%231, %c0_136] : memref<8x128xf32, #tpu.memory_space<vmem>>, vector<1x128xf32>
      %c7_137 = arith.constant 7 : index
      %c0_138 = arith.constant 0 : index
      %233 = vector.load %arg18[%c7_137, %c0_138] : memref<8x128xf32, #tpu.memory_space<vmem>>, vector<1x128xf32>
      tpu.vector_store %arg18[%c7_137, %c0_138], %232 {strides = array<i32>} : memref<8x128xf32, #tpu.memory_space<vmem>>, vector<1x128xf32>,
      %234 = arith.index_cast %224 : i32 to index
      %c0_139 = arith.constant 0 : index
      %235 = vector.load %arg6[%234, %c0_139] : memref<32x128xf32, #tpu.memory_space<vmem>>, vector<1x128xf32>
      %c7_140 = arith.constant 7 : index
      %c0_141 = arith.constant 0 : index
      %236 = vector.load %arg17[%c7_140, %c0_141] : memref<8x128xf32, #tpu.memory_space<vmem>>, vector<1x128xf32>
      tpu.vector_store %arg17[%c7_140, %c0_141], %235 {strides = array<i32>} : memref<8x128xf32, #tpu.memory_space<vmem>>, vector<1x128xf32>,
      %c1_i32_142 = arith.constant 1 : i32
      %237 = arith.addi %227, %c1_i32_142 : i32
      %238 = arith.index_cast %237 : i32 to index
      %c0_143 = arith.constant 0 : index
      %239 = vector.load %arg8[%238, %c0_143] : memref<8x128xf32, #tpu.memory_space<vmem>>, vector<1x128xf32>
      %c7_144 = arith.constant 7 : index
      %c0_145 = arith.constant 0 : index
      %240 = vector.load %arg19[%c7_144, %c0_145] : memref<8x128xf32, #tpu.memory_space<vmem>>, vector<1x128xf32>
      tpu.vector_store %arg19[%c7_144, %c0_145], %239 {strides = array<i32>} : memref<8x128xf32, #tpu.memory_space<vmem>>, vector<1x128xf32>,
      %241 = arith.index_cast %64 : i32 to index
      %c0_146 = arith.constant 0 : index
      %242 = vector.load %arg4[%241, %c0_146] : memref<24x1xf32, #tpu.memory_space<vmem>>, vector<8x1xf32>
      %c0_147 = arith.constant 0 : index
      %c0_148 = arith.constant 0 : index
      %243 = vector.load %arg16[%c0_147, %c0_148] : memref<8x128xf32, #tpu.memory_space<vmem>>, vector<8x128xf32>
      %c0_149 = arith.constant 0 : index
      %c0_150 = arith.constant 0 : index
      %244 = vector.load %arg18[%c0_149, %c0_150] : memref<8x128xf32, #tpu.memory_space<vmem>>, vector<8x128xf32>
      %245 = arith.subf %243, %244 : vector<8x128xf32>
      %246 = vector.broadcast %242 : vector<8x1xf32> to vector<8x128xf32>
      %247 = arith.mulf %245, %246 : vector<8x128xf32>
      %c0_151 = arith.constant 0 : index
      %c0_152 = arith.constant 0 : index
      %248 = vector.load %arg17[%c0_151, %c0_152] : memref<8x128xf32, #tpu.memory_space<vmem>>, vector<8x128xf32>
      %c0_153 = arith.constant 0 : index
      %c0_154 = arith.constant 0 : index
      %249 = vector.load %arg19[%c0_153, %c0_154] : memref<8x128xf32, #tpu.memory_space<vmem>>, vector<8x128xf32>
      %250 = arith.subf %248, %249 : vector<8x128xf32>
      %251 = vector.broadcast %242 : vector<8x1xf32> to vector<8x128xf32>
      %252 = arith.mulf %250, %251 : vector<8x128xf32>
      %c0_i32_155 = arith.constant 0 : i32
      %253 = arith.addi %64, %c0_i32_155 : i32
      %254 = arith.index_cast %253 : i32 to index
      %255 = memref.load %arg1[%254] : memref<24xi32, #tpu.memory_space<smem>>
      %c0_i32_156 = arith.constant 0 : i32
      %256 = arith.addi %64, %c0_i32_156 : i32
      %257 = arith.index_cast %256 : i32 to index
      %258 = memref.load %arg2[%257] : memref<24xi32, #tpu.memory_space<smem>>
      %259 = arith.index_cast %258 : i32 to index
      %c0_157 = arith.constant 0 : index
      %260 = vector.load %arg14[%259, %c0_157] : memref<32x128xf32, #tpu.memory_space<vmem>>, vector<1x128xf32>
      %261 = vector.extract_strided_slice %247 {offsets = [0, 0], sizes = [1, 128], strides = [1, 1]} : vector<8x128xf32> to vector<1x128xf32>
      %262 = arith.addf %260, %261 : vector<1x128xf32>
      %263 = arith.index_cast %258 : i32 to index
      %c0_158 = arith.constant 0 : index
      %264 = vector.load %arg14[%263, %c0_158] : memref<32x128xf32, #tpu.memory_space<vmem>>, vector<1x128xf32>
      tpu.vector_store %arg14[%263, %c0_158], %262 {strides = array<i32>} : memref<32x128xf32, #tpu.memory_space<vmem>>, vector<1x128xf32>,
      %265 = arith.index_cast %255 : i32 to index
      %c0_159 = arith.constant 0 : index
      %266 = vector.load %arg15[%265, %c0_159] : memref<32x128xf32, #tpu.memory_space<vmem>>, vector<1x128xf32>
      %267 = vector.extract_strided_slice %252 {offsets = [0, 0], sizes = [1, 128], strides = [1, 1]} : vector<8x128xf32> to vector<1x128xf32>
      %268 = arith.addf %266, %267 : vector<1x128xf32>
      %269 = arith.index_cast %255 : i32 to index
      %c0_160 = arith.constant 0 : index
      %270 = vector.load %arg15[%269, %c0_160] : memref<32x128xf32, #tpu.memory_space<vmem>>, vector<1x128xf32>
      tpu.vector_store %arg15[%269, %c0_160], %268 {strides = array<i32>} : memref<32x128xf32, #tpu.memory_space<vmem>>, vector<1x128xf32>,
      %c1_i32_161 = arith.constant 1 : i32
      %271 = arith.addi %64, %c1_i32_161 : i32
      %272 = arith.index_cast %271 : i32 to index
      %273 = memref.load %arg1[%272] : memref<24xi32, #tpu.memory_space<smem>>
      %c1_i32_162 = arith.constant 1 : i32
      %274 = arith.addi %64, %c1_i32_162 : i32
      %275 = arith.index_cast %274 : i32 to index
      %276 = memref.load %arg2[%275] : memref<24xi32, #tpu.memory_space<smem>>
      %277 = arith.index_cast %276 : i32 to index
      %c0_163 = arith.constant 0 : index
      %278 = vector.load %arg14[%277, %c0_163] : memref<32x128xf32, #tpu.memory_space<vmem>>, vector<1x128xf32>
      %279 = vector.extract_strided_slice %247 {offsets = [1, 0], sizes = [1, 128], strides = [1, 1]} : vector<8x128xf32> to vector<1x128xf32>
      %280 = arith.addf %278, %279 : vector<1x128xf32>
      %281 = arith.index_cast %276 : i32 to index
      %c0_164 = arith.constant 0 : index
      %282 = vector.load %arg14[%281, %c0_164] : memref<32x128xf32, #tpu.memory_space<vmem>>, vector<1x128xf32>
      tpu.vector_store %arg14[%281, %c0_164], %280 {strides = array<i32>} : memref<32x128xf32, #tpu.memory_space<vmem>>, vector<1x128xf32>,
      %283 = arith.index_cast %273 : i32 to index
      %c0_165 = arith.constant 0 : index
      %284 = vector.load %arg15[%283, %c0_165] : memref<32x128xf32, #tpu.memory_space<vmem>>, vector<1x128xf32>
      %285 = vector.extract_strided_slice %252 {offsets = [1, 0], sizes = [1, 128], strides = [1, 1]} : vector<8x128xf32> to vector<1x128xf32>
      %286 = arith.addf %284, %285 : vector<1x128xf32>
      %287 = arith.index_cast %273 : i32 to index
      %c0_166 = arith.constant 0 : index
      %288 = vector.load %arg15[%287, %c0_166] : memref<32x128xf32, #tpu.memory_space<vmem>>, vector<1x128xf32>
      tpu.vector_store %arg15[%287, %c0_166], %286 {strides = array<i32>} : memref<32x128xf32, #tpu.memory_space<vmem>>, vector<1x128xf32>,
      %c2_i32_167 = arith.constant 2 : i32
      %289 = arith.addi %64, %c2_i32_167 : i32
      %290 = arith.index_cast %289 : i32 to index
      %291 = memref.load %arg1[%290] : memref<24xi32, #tpu.memory_space<smem>>
      %c2_i32_168 = arith.constant 2 : i32
      %292 = arith.addi %64, %c2_i32_168 : i32
      %293 = arith.index_cast %292 : i32 to index
      %294 = memref.load %arg2[%293] : memref<24xi32, #tpu.memory_space<smem>>
      %295 = arith.index_cast %294 : i32 to index
      %c0_169 = arith.constant 0 : index
      %296 = vector.load %arg14[%295, %c0_169] : memref<32x128xf32, #tpu.memory_space<vmem>>, vector<1x128xf32>
      %297 = vector.extract_strided_slice %247 {offsets = [2, 0], sizes = [1, 128], strides = [1, 1]} : vector<8x128xf32> to vector<1x128xf32>
      %298 = arith.addf %296, %297 : vector<1x128xf32>
      %299 = arith.index_cast %294 : i32 to index
      %c0_170 = arith.constant 0 : index
      %300 = vector.load %arg14[%299, %c0_170] : memref<32x128xf32, #tpu.memory_space<vmem>>, vector<1x128xf32>
      tpu.vector_store %arg14[%299, %c0_170], %298 {strides = array<i32>} : memref<32x128xf32, #tpu.memory_space<vmem>>, vector<1x128xf32>,
      %301 = arith.index_cast %291 : i32 to index
      %c0_171 = arith.constant 0 : index
      %302 = vector.load %arg15[%301, %c0_171] : memref<32x128xf32, #tpu.memory_space<vmem>>, vector<1x128xf32>
      %303 = vector.extract_strided_slice %252 {offsets = [2, 0], sizes = [1, 128], strides = [1, 1]} : vector<8x128xf32> to vector<1x128xf32>
      %304 = arith.addf %302, %303 : vector<1x128xf32>
      %305 = arith.index_cast %291 : i32 to index
      %c0_172 = arith.constant 0 : index
      %306 = vector.load %arg15[%305, %c0_172] : memref<32x128xf32, #tpu.memory_space<vmem>>, vector<1x128xf32>
      tpu.vector_store %arg15[%305, %c0_172], %304 {strides = array<i32>} : memref<32x128xf32, #tpu.memory_space<vmem>>, vector<1x128xf32>,
      %c3_i32_173 = arith.constant 3 : i32
      %307 = arith.addi %64, %c3_i32_173 : i32
      %308 = arith.index_cast %307 : i32 to index
      %309 = memref.load %arg1[%308] : memref<24xi32, #tpu.memory_space<smem>>
      %c3_i32_174 = arith.constant 3 : i32
      %310 = arith.addi %64, %c3_i32_174 : i32
      %311 = arith.index_cast %310 : i32 to index
      %312 = memref.load %arg2[%311] : memref<24xi32, #tpu.memory_space<smem>>
      %313 = arith.index_cast %312 : i32 to index
      %c0_175 = arith.constant 0 : index
      %314 = vector.load %arg14[%313, %c0_175] : memref<32x128xf32, #tpu.memory_space<vmem>>, vector<1x128xf32>
      %315 = vector.extract_strided_slice %247 {offsets = [3, 0], sizes = [1, 128], strides = [1, 1]} : vector<8x128xf32> to vector<1x128xf32>
      %316 = arith.addf %314, %315 : vector<1x128xf32>
      %317 = arith.index_cast %312 : i32 to index
      %c0_176 = arith.constant 0 : index
      %318 = vector.load %arg14[%317, %c0_176] : memref<32x128xf32, #tpu.memory_space<vmem>>, vector<1x128xf32>
      tpu.vector_store %arg14[%317, %c0_176], %316 {strides = array<i32>} : memref<32x128xf32, #tpu.memory_space<vmem>>, vector<1x128xf32>,
      %319 = arith.index_cast %309 : i32 to index
      %c0_177 = arith.constant 0 : index
      %320 = vector.load %arg15[%319, %c0_177] : memref<32x128xf32, #tpu.memory_space<vmem>>, vector<1x128xf32>
      %321 = vector.extract_strided_slice %252 {offsets = [3, 0], sizes = [1, 128], strides = [1, 1]} : vector<8x128xf32> to vector<1x128xf32>
      %322 = arith.addf %320, %321 : vector<1x128xf32>
      %323 = arith.index_cast %309 : i32 to index
      %c0_178 = arith.constant 0 : index
      %324 = vector.load %arg15[%323, %c0_178] : memref<32x128xf32, #tpu.memory_space<vmem>>, vector<1x128xf32>
      tpu.vector_store %arg15[%323, %c0_178], %322 {strides = array<i32>} : memref<32x128xf32, #tpu.memory_space<vmem>>, vector<1x128xf32>,
      %c4_i32_179 = arith.constant 4 : i32
      %325 = arith.addi %64, %c4_i32_179 : i32
      %326 = arith.index_cast %325 : i32 to index
      %327 = memref.load %arg1[%326] : memref<24xi32, #tpu.memory_space<smem>>
      %c4_i32_180 = arith.constant 4 : i32
      %328 = arith.addi %64, %c4_i32_180 : i32
      %329 = arith.index_cast %328 : i32 to index
      %330 = memref.load %arg2[%329] : memref<24xi32, #tpu.memory_space<smem>>
      %331 = arith.index_cast %330 : i32 to index
      %c0_181 = arith.constant 0 : index
      %332 = vector.load %arg14[%331, %c0_181] : memref<32x128xf32, #tpu.memory_space<vmem>>, vector<1x128xf32>
      %333 = vector.extract_strided_slice %247 {offsets = [4, 0], sizes = [1, 128], strides = [1, 1]} : vector<8x128xf32> to vector<1x128xf32>
      %334 = arith.addf %332, %333 : vector<1x128xf32>
      %335 = arith.index_cast %330 : i32 to index
      %c0_182 = arith.constant 0 : index
      %336 = vector.load %arg14[%335, %c0_182] : memref<32x128xf32, #tpu.memory_space<vmem>>, vector<1x128xf32>
      tpu.vector_store %arg14[%335, %c0_182], %334 {strides = array<i32>} : memref<32x128xf32, #tpu.memory_space<vmem>>, vector<1x128xf32>,
      %337 = arith.index_cast %327 : i32 to index
      %c0_183 = arith.constant 0 : index
      %338 = vector.load %arg15[%337, %c0_183] : memref<32x128xf32, #tpu.memory_space<vmem>>, vector<1x128xf32>
      %339 = vector.extract_strided_slice %252 {offsets = [4, 0], sizes = [1, 128], strides = [1, 1]} : vector<8x128xf32> to vector<1x128xf32>
      %340 = arith.addf %338, %339 : vector<1x128xf32>
      %341 = arith.index_cast %327 : i32 to index
      %c0_184 = arith.constant 0 : index
      %342 = vector.load %arg15[%341, %c0_184] : memref<32x128xf32, #tpu.memory_space<vmem>>, vector<1x128xf32>
      tpu.vector_store %arg15[%341, %c0_184], %340 {strides = array<i32>} : memref<32x128xf32, #tpu.memory_space<vmem>>, vector<1x128xf32>,
      %c5_i32_185 = arith.constant 5 : i32
      %343 = arith.addi %64, %c5_i32_185 : i32
      %344 = arith.index_cast %343 : i32 to index
      %345 = memref.load %arg1[%344] : memref<24xi32, #tpu.memory_space<smem>>
      %c5_i32_186 = arith.constant 5 : i32
      %346 = arith.addi %64, %c5_i32_186 : i32
      %347 = arith.index_cast %346 : i32 to index
      %348 = memref.load %arg2[%347] : memref<24xi32, #tpu.memory_space<smem>>
      %349 = arith.index_cast %348 : i32 to index
      %c0_187 = arith.constant 0 : index
      %350 = vector.load %arg14[%349, %c0_187] : memref<32x128xf32, #tpu.memory_space<vmem>>, vector<1x128xf32>
      %351 = vector.extract_strided_slice %247 {offsets = [5, 0], sizes = [1, 128], strides = [1, 1]} : vector<8x128xf32> to vector<1x128xf32>
      %352 = arith.addf %350, %351 : vector<1x128xf32>
      %353 = arith.index_cast %348 : i32 to index
      %c0_188 = arith.constant 0 : index
      %354 = vector.load %arg14[%353, %c0_188] : memref<32x128xf32, #tpu.memory_space<vmem>>, vector<1x128xf32>
      tpu.vector_store %arg14[%353, %c0_188], %352 {strides = array<i32>} : memref<32x128xf32, #tpu.memory_space<vmem>>, vector<1x128xf32>,
      %355 = arith.index_cast %345 : i32 to index
      %c0_189 = arith.constant 0 : index
      %356 = vector.load %arg15[%355, %c0_189] : memref<32x128xf32, #tpu.memory_space<vmem>>, vector<1x128xf32>
      %357 = vector.extract_strided_slice %252 {offsets = [5, 0], sizes = [1, 128], strides = [1, 1]} : vector<8x128xf32> to vector<1x128xf32>
      %358 = arith.addf %356, %357 : vector<1x128xf32>
      %359 = arith.index_cast %345 : i32 to index
      %c0_190 = arith.constant 0 : index
      %360 = vector.load %arg15[%359, %c0_190] : memref<32x128xf32, #tpu.memory_space<vmem>>, vector<1x128xf32>
      tpu.vector_store %arg15[%359, %c0_190], %358 {strides = array<i32>} : memref<32x128xf32, #tpu.memory_space<vmem>>, vector<1x128xf32>,
      %c6_i32_191 = arith.constant 6 : i32
      %361 = arith.addi %64, %c6_i32_191 : i32
      %362 = arith.index_cast %361 : i32 to index
      %363 = memref.load %arg1[%362] : memref<24xi32, #tpu.memory_space<smem>>
      %c6_i32_192 = arith.constant 6 : i32
      %364 = arith.addi %64, %c6_i32_192 : i32
      %365 = arith.index_cast %364 : i32 to index
      %366 = memref.load %arg2[%365] : memref<24xi32, #tpu.memory_space<smem>>
      %367 = arith.index_cast %366 : i32 to index
      %c0_193 = arith.constant 0 : index
      %368 = vector.load %arg14[%367, %c0_193] : memref<32x128xf32, #tpu.memory_space<vmem>>, vector<1x128xf32>
      %369 = vector.extract_strided_slice %247 {offsets = [6, 0], sizes = [1, 128], strides = [1, 1]} : vector<8x128xf32> to vector<1x128xf32>
      %370 = arith.addf %368, %369 : vector<1x128xf32>
      %371 = arith.index_cast %366 : i32 to index
      %c0_194 = arith.constant 0 : index
      %372 = vector.load %arg14[%371, %c0_194] : memref<32x128xf32, #tpu.memory_space<vmem>>, vector<1x128xf32>
      tpu.vector_store %arg14[%371, %c0_194], %370 {strides = array<i32>} : memref<32x128xf32, #tpu.memory_space<vmem>>, vector<1x128xf32>,
      %373 = arith.index_cast %363 : i32 to index
      %c0_195 = arith.constant 0 : index
      %374 = vector.load %arg15[%373, %c0_195] : memref<32x128xf32, #tpu.memory_space<vmem>>, vector<1x128xf32>
      %375 = vector.extract_strided_slice %252 {offsets = [6, 0], sizes = [1, 128], strides = [1, 1]} : vector<8x128xf32> to vector<1x128xf32>
      %376 = arith.addf %374, %375 : vector<1x128xf32>
      %377 = arith.index_cast %363 : i32 to index
      %c0_196 = arith.constant 0 : index
      %378 = vector.load %arg15[%377, %c0_196] : memref<32x128xf32, #tpu.memory_space<vmem>>, vector<1x128xf32>
      tpu.vector_store %arg15[%377, %c0_196], %376 {strides = array<i32>} : memref<32x128xf32, #tpu.memory_space<vmem>>, vector<1x128xf32>,
      %c7_i32_197 = arith.constant 7 : i32
      %379 = arith.addi %64, %c7_i32_197 : i32
      %380 = arith.index_cast %379 : i32 to index
      %381 = memref.load %arg1[%380] : memref<24xi32, #tpu.memory_space<smem>>
      %c7_i32_198 = arith.constant 7 : i32
      %382 = arith.addi %64, %c7_i32_198 : i32
      %383 = arith.index_cast %382 : i32 to index
      %384 = memref.load %arg2[%383] : memref<24xi32, #tpu.memory_space<smem>>
      %385 = arith.index_cast %384 : i32 to index
      %c0_199 = arith.constant 0 : index
      %386 = vector.load %arg14[%385, %c0_199] : memref<32x128xf32, #tpu.memory_space<vmem>>, vector<1x128xf32>
      %387 = vector.extract_strided_slice %247 {offsets = [7, 0], sizes = [1, 128], strides = [1, 1]} : vector<8x128xf32> to vector<1x128xf32>
      %388 = arith.addf %386, %387 : vector<1x128xf32>
      %389 = arith.index_cast %384 : i32 to index
      %c0_200 = arith.constant 0 : index
      %390 = vector.load %arg14[%389, %c0_200] : memref<32x128xf32, #tpu.memory_space<vmem>>, vector<1x128xf32>
      tpu.vector_store %arg14[%389, %c0_200], %388 {strides = array<i32>} : memref<32x128xf32, #tpu.memory_space<vmem>>, vector<1x128xf32>,
      %391 = arith.index_cast %381 : i32 to index
      %c0_201 = arith.constant 0 : index
      %392 = vector.load %arg15[%391, %c0_201] : memref<32x128xf32, #tpu.memory_space<vmem>>, vector<1x128xf32>
      %393 = vector.extract_strided_slice %252 {offsets = [7, 0], sizes = [1, 128], strides = [1, 1]} : vector<8x128xf32> to vector<1x128xf32>
      %394 = arith.addf %392, %393 : vector<1x128xf32>
      %395 = arith.index_cast %381 : i32 to index
      %c0_202 = arith.constant 0 : index
      %396 = vector.load %arg15[%395, %c0_202] : memref<32x128xf32, #tpu.memory_space<vmem>>, vector<1x128xf32>
      tpu.vector_store %arg15[%395, %c0_202], %394 {strides = array<i32>} : memref<32x128xf32, #tpu.memory_space<vmem>>, vector<1x128xf32>,
    }
    %c3_i32_4 = arith.constant 3 : i32
    %cst_5 = arith.constant 0.000000e+00 : f32
    %5 = vector.broadcast %cst_5 : f32 to vector<1x128xf32>
    %c0_i32_6 = arith.constant 0 : i32
    %c32_i32 = arith.constant 32 : i32
    %6 = arith.muli %c0_i32_6, %c32_i32 : i32
    %7 = tpu.assume_multiple %6, 32 : i32
    %8 = arith.index_cast %7 : i32 to index
    %c0_7 = arith.constant 0 : index
    %9 = vector.load %arg9[%8, %c0_7] : memref<32x128xf32, #tpu.memory_space<vmem>>, vector<32x128xf32>
    %10 = arith.index_cast %7 : i32 to index
    %c0_8 = arith.constant 0 : index
    %11 = vector.load %arg14[%10, %c0_8] : memref<32x128xf32, #tpu.memory_space<vmem>>, vector<32x128xf32>
    %12 = arith.addf %9, %11 : vector<32x128xf32>
    %13 = arith.index_cast %7 : i32 to index
    %c0_9 = arith.constant 0 : index
    %14 = vector.load %arg15[%13, %c0_9] : memref<32x128xf32, #tpu.memory_space<vmem>>, vector<32x128xf32>
    %15 = arith.addf %12, %14 : vector<32x128xf32>
    %cst_10 = arith.constant 0.333333343 : f32
    %16 = vector.broadcast %cst_10 : f32 to vector<32x128xf32>
    %17 = arith.mulf %15, %16 : vector<32x128xf32>
    %c0_11 = arith.constant 0 : index
    %c0_12 = arith.constant 0 : index
    %18 = vector.load %arg10[%c0_11, %c0_12] : memref<1x128xf32, #tpu.memory_space<vmem>>, vector<1x128xf32>
    %19 = vector.broadcast %18 : vector<1x128xf32> to vector<32x128xf32>
    %20 = arith.addf %17, %19 : vector<32x128xf32>
    %21 = arith.index_cast %7 : i32 to index
    %c0_13 = arith.constant 0 : index
    %22 = vector.load %arg13[%21, %c0_13] : memref<32x128xf32, #tpu.memory_space<vmem>>, vector<32x128xf32>
    tpu.vector_store %arg13[%21, %c0_13], %20 {strides = array<i32>} : memref<32x128xf32, #tpu.memory_space<vmem>>, vector<32x128xf32>,
    %23 = tpu.iota {dimensions = array<i32: 0>} : vector<32x1xi32>
    %24 = vector.broadcast %7 : i32 to vector<32x1xi32>
    %25 = arith.addi %23, %24 : vector<32x1xi32>
    %c32_i32_14 = arith.constant 32 : i32
    %26 = vector.broadcast %c32_i32_14 : i32 to vector<32x1xi32>
    %27 = arith.cmpi slt, %25, %26 : vector<32x1xi32>
    %28 = arith.extui %27 : vector<32x1xi1> to vector<32x1xi32>
    %29 = arith.sitofp %28 : vector<32x1xi32> to vector<32x1xf32>
    %30 = vector.broadcast %29 : vector<32x1xf32> to vector<32x128xf32>
    %31 = arith.mulf %20, %30 : vector<32x128xf32>
    %cst_15 = arith.constant dense<0.000000e+00> : vector<128xf32>
    %32 = vector.multi_reduction <add>, %31, %cst_15 [0] : vector<32x128xf32> to vector<128xf32>
    %33 = vector.shape_cast %32 : vector<128xf32> to vector<1x128xf32>
    %34 = arith.addf %5, %33 : vector<1x128xf32>
    %35 = arith.mulf %31, %20 : vector<32x128xf32>
    %cst_16 = arith.constant dense<0.000000e+00> : vector<128xf32>
    %36 = vector.multi_reduction <add>, %35, %cst_16 [0] : vector<32x128xf32> to vector<128xf32>
    %37 = vector.shape_cast %36 : vector<128xf32> to vector<1x128xf32>
    %38 = arith.addf %5, %37 : vector<1x128xf32>
    %c1_i32_17 = arith.constant 1 : i32
    %cst_18 = arith.constant 3.125000e-02 : f32
    %39 = vector.broadcast %cst_18 : f32 to vector<1x128xf32>
    %40 = arith.mulf %34, %39 : vector<1x128xf32>
    %cst_19 = arith.constant 3.125000e-02 : f32
    %41 = vector.broadcast %cst_19 : f32 to vector<1x128xf32>
    %42 = arith.mulf %38, %41 : vector<1x128xf32>
    %43 = arith.mulf %40, %40 : vector<1x128xf32>
    %44 = arith.subf %42, %43 : vector<1x128xf32>
    %c0_20 = arith.constant 0 : index
    %c0_21 = arith.constant 0 : index
    %45 = vector.load %arg11[%c0_20, %c0_21] : memref<1x128xf32, #tpu.memory_space<vmem>>, vector<1x128xf32>
    %cst_22 = arith.constant 9.99999974E-6 : f32
    %46 = vector.broadcast %cst_22 : f32 to vector<1x128xf32>
    %47 = arith.addf %44, %46 : vector<1x128xf32>
    %48 = math.rsqrt %47 : vector<1x128xf32>
    %49 = arith.mulf %45, %48 : vector<1x128xf32>
    %c0_23 = arith.constant 0 : index
    %c0_24 = arith.constant 0 : index
    %50 = vector.load %arg12[%c0_23, %c0_24] : memref<1x128xf32, #tpu.memory_space<vmem>>, vector<1x128xf32>
    %51 = arith.mulf %40, %49 : vector<1x128xf32>
    %52 = arith.subf %50, %51 : vector<1x128xf32>
    %c0_i32_25 = arith.constant 0 : i32
    %c32_i32_26 = arith.constant 32 : i32
    %53 = arith.muli %c0_i32_25, %c32_i32_26 : i32
    %54 = tpu.assume_multiple %53, 32 : i32
    %55 = arith.index_cast %54 : i32 to index
    %c0_27 = arith.constant 0 : index
    %56 = vector.load %arg13[%55, %c0_27] : memref<32x128xf32, #tpu.memory_space<vmem>>, vector<32x128xf32>
    %57 = vector.broadcast %49 : vector<1x128xf32> to vector<32x128xf32>
    %58 = arith.mulf %56, %57 : vector<32x128xf32>
    %59 = vector.broadcast %52 : vector<1x128xf32> to vector<32x128xf32>
    %60 = arith.addf %58, %59 : vector<32x128xf32>
    %61 = arith.index_cast %54 : i32 to index
    %c0_28 = arith.constant 0 : index
    %62 = vector.load %arg13[%61, %c0_28] : memref<32x128xf32, #tpu.memory_space<vmem>>, vector<32x128xf32>
    tpu.vector_store %arg13[%61, %c0_28], %60 {strides = array<i32>} : memref<32x128xf32, #tpu.memory_space<vmem>>, vector<32x128xf32>,
    %c1_i32_29 = arith.constant 1 : i32
    return
  }
  func.func @transform_0(%arg0: i32, %arg1: memref<24xi32, #tpu.memory_space<smem>>, %arg2: memref<24xi32, #tpu.memory_space<smem>>, %arg3: memref<24xi32, #tpu.memory_space<smem>>) -> (i32, i32) {
    %c0_i32 = arith.constant 0 : i32
    %c0_i32_0 = arith.constant 0 : i32
    %c0_i32_1 = arith.constant 0 : i32
    return %c0_i32, %c0_i32_0 : i32, i32
  }
  func.func @transform_1(%arg0: i32, %arg1: memref<24xi32, #tpu.memory_space<smem>>, %arg2: memref<24xi32, #tpu.memory_space<smem>>, %arg3: memref<24xi32, #tpu.memory_space<smem>>) -> (i32, i32) {
    %c0_i32 = arith.constant 0 : i32
    %c0_i32_0 = arith.constant 0 : i32
    %c0_i32_1 = arith.constant 0 : i32
    return %c0_i32, %c0_i32_0 : i32, i32
  }
  func.func @transform_2(%arg0: i32, %arg1: memref<24xi32, #tpu.memory_space<smem>>, %arg2: memref<24xi32, #tpu.memory_space<smem>>, %arg3: memref<24xi32, #tpu.memory_space<smem>>) -> (i32, i32) {
    %c0_i32 = arith.constant 0 : i32
    %c0_i32_0 = arith.constant 0 : i32
    %c0_i32_1 = arith.constant 0 : i32
    return %c0_i32, %c0_i32_0 : i32, i32
  }
  func.func @transform_3(%arg0: i32, %arg1: memref<24xi32, #tpu.memory_space<smem>>, %arg2: memref<24xi32, #tpu.memory_space<smem>>, %arg3: memref<24xi32, #tpu.memory_space<smem>>) -> (i32, i32) {
    %c0_i32 = arith.constant 0 : i32
    %c0_i32_0 = arith.constant 0 : i32
    %c0_i32_1 = arith.constant 0 : i32
    return %c0_i32, %c0_i32_0 : i32, i32
  }
  func.func @transform_4(%arg0: i32, %arg1: memref<24xi32, #tpu.memory_space<smem>>, %arg2: memref<24xi32, #tpu.memory_space<smem>>, %arg3: memref<24xi32, #tpu.memory_space<smem>>) -> (i32, i32) {
    %c0_i32 = arith.constant 0 : i32
    %c0_i32_0 = arith.constant 0 : i32
    %c0_i32_1 = arith.constant 0 : i32
    return %c0_i32, %c0_i32_0 : i32, i32
  }
  func.func @transform_5(%arg0: i32, %arg1: memref<24xi32, #tpu.memory_space<smem>>, %arg2: memref<24xi32, #tpu.memory_space<smem>>, %arg3: memref<24xi32, #tpu.memory_space<smem>>) -> (i32, i32) {
    %c0_i32 = arith.constant 0 : i32
    %c0_i32_0 = arith.constant 0 : i32
    %c0_i32_1 = arith.constant 0 : i32
    return %c0_i32, %c0_i32_0 : i32, i32
  }
  func.func @transform_6(%arg0: i32, %arg1: memref<24xi32, #tpu.memory_space<smem>>, %arg2: memref<24xi32, #tpu.memory_space<smem>>, %arg3: memref<24xi32, #tpu.memory_space<smem>>) -> (i32, i32) {
    %c0_i32 = arith.constant 0 : i32
    %c0_i32_0 = arith.constant 0 : i32
    %c0_i32_1 = arith.constant 0 : i32
    return %c0_i32, %c0_i32_0 : i32, i32
  }
  func.func @transform_7(%arg0: i32, %arg1: memref<24xi32, #tpu.memory_space<smem>>, %arg2: memref<24xi32, #tpu.memory_space<smem>>, %arg3: memref<24xi32, #tpu.memory_space<smem>>) -> (i32, i32) {
    %c0_i32 = arith.constant 0 : i32
    %c0_i32_0 = arith.constant 0 : i32
    %c0_i32_1 = arith.constant 0 : i32
    return %c0_i32, %c0_i32_0 : i32, i32
  }
  func.func @transform_8(%arg0: i32, %arg1: memref<24xi32, #tpu.memory_space<smem>>, %arg2: memref<24xi32, #tpu.memory_space<smem>>, %arg3: memref<24xi32, #tpu.memory_space<smem>>) -> (i32, i32) {
    %c0_i32 = arith.constant 0 : i32
    %c0_i32_0 = arith.constant 0 : i32
    %c0_i32_1 = arith.constant 0 : i32
    return %c0_i32, %c0_i32_0 : i32, i32
  }
  func.func @transform_9(%arg0: i32, %arg1: memref<24xi32, #tpu.memory_space<smem>>, %arg2: memref<24xi32, #tpu.memory_space<smem>>, %arg3: memref<24xi32, #tpu.memory_space<smem>>) -> (i32, i32) {
    %c0_i32 = arith.constant 0 : i32
    %c0_i32_0 = arith.constant 0 : i32
    %c0_i32_1 = arith.constant 0 : i32
    return %c0_i32, %c0_i32_0 : i32, i32
  }
}

</mosaic_0001>

<bundles_post_ra>
// kernel: compgcn_forward.1
= control target key start
LH: loop header
LB: loop body
LE: loop exit
PB: predicated region body
PF: predicated region fallthrough
CT: control target
= control target key end

     0   :  { %s901_s0 = inlined_call_operand.vmem [shape: s32[24], index: 0, kind: input, shape index: {}]   ;;  %s902_s3 = inlined_call_operand.vmem [shape: f32[24,1], index: 3, kind: input, shape index: {}]   ;;  %s903_s4 = inlined_call_operand.vmem [shape: f32[32,128], index: 4, kind: input, shape index: {}]   ;;  %s904_s5 = inlined_call_operand.vmem [shape: f32[32,128], index: 5, kind: input, shape index: {}]   ;;  %s905_s6 = inlined_call_operand.vmem [shape: f32[8,128], index: 6, kind: input, shape index: {}]   ;;  %s906_s7 = inlined_call_operand.vmem [shape: f32[8,128], index: 7, kind: input, shape index: {}]   ;;  %s907_s8 = inlined_call_operand.vmem [shape: f32[32,128], index: 8, kind: input, shape index: {}]   ;;  %s908_s9 = inlined_call_operand.vmem [shape: f32[1,128], index: 9, kind: input, shape index: {}]   ;;  %s909_s10 = inlined_call_operand.vmem [shape: f32[1,128], index: 10, kind: input, shape index: {}]   ;;  %s910_s11 = inlined_call_operand.vmem [shape: f32[1,128], index: 11, kind: input, shape index: {}]   ;;  %s911_s12 = inlined_call_operand.vmem [shape: f32[32,128], index: 12, kind: output, shape index: {}]   ;;  %s912_s1 = inlined_call_operand.vmem [shape: s32[24], index: 1, kind: input, shape index: {}]   ;;  %s913_s2 = inlined_call_operand.vmem [shape: s32[24], index: 2, kind: input, shape index: {}]  }
   0x1   :  { %917 = sst [smem:[#allocation14_spill]] %s902_s3  ;;  %s17_s23 = sshll.u32 %s901_s0, 4  ;;  %s18_s23 = int_to_ptr.vmem [resolvable:$true] %s17_s23 }
   0x2   :  { %918 = sst [smem:[#allocation15_spill]] %s907_s8  ;;  %s21_s26 = sshll.u32 %s912_s1, 4  ;;  %s22_s26 = int_to_ptr.vmem [resolvable:$true] %s21_s26 }
   0x3   :  { %919 = sst [smem:[#allocation16_spill]] %s908_s9  ;;  %s545_s27 = scalar_lea.vmem %s18_s23, 16 }
   0x4   :  { %920 = sst [smem:[#allocation17_spill]] %s909_s10  ;;  %p546_p0 = scmp.ne.s32.totalorder %s18_s23, %s545_s27 }
   0x5   :  { %921 = sst [smem:[#allocation18_spill]] %s910_s11  ;;  %p550_p1 = scmp.lt.s32.totalorder %s18_s23, %s18_s23 }
   0x6   :  { %922 = sst [smem:[#allocation19_spill]] %s911_s12  ;;  %p551_p2 = scmp.lt.s32.totalorder %s545_s27, %s545_s27 }
   0x8   :  { %p552_p3 = por %p551_p2, %p550_p1 }
   0xa   :  { %p553_p4 = pnand %p552_p3, %p546_p0 }
   0xc   :  { %556 = shalt.err (!%p553_p4)  }
   0xd   :  { %s591_s28 = smov [#allocation9]   ;;  %s557_s29 = scalar_lea.vmem %s22_s26, 16 }
   0xe   :  { %20 = dma.vmem_to_smem %s18_s23, 16, %s591_s28, [#allocation8] }
   0xf   :  { %p558_p5 = scmp.ne.s32.totalorder %s22_s26, %s557_s29  ;;  %p562_p6 = scmp.lt.s32.totalorder %s22_s26, %s22_s26 }
  0x10   :  { %p563_p7 = scmp.lt.s32.totalorder %s557_s29, %s557_s29 }
  0x12   :  { %p564_p8 = por %p563_p7, %p562_p6 }
  0x14   :  { %p565_p9 = pnand %p564_p8, %p558_p5 }
  0x16   :  { %568 = shalt.err (!%p565_p9)  }
  0x17   :  { %s592_s0 = smov [#allocation10]   ;;  %s25_s13 = sshll.u32 %s913_s2, 4  ;;  %s26_s13 = int_to_ptr.vmem [resolvable:$true] %s25_s13 }
  0x18   :  { %24 = dma.vmem_to_smem %s22_s26, 16, %s592_s0, [#allocation8] }
  0x19   :  { %s569_s14 = scalar_lea.vmem %s26_s13, 16  ;;  %p574_p11 = scmp.lt.s32.totalorder %s26_s13, %s26_s13 }
  0x1a   :  { %p570_p10 = scmp.ne.s32.totalorder %s26_s13, %s569_s14  ;;  %p575_p12 = scmp.lt.s32.totalorder %s569_s14, %s569_s14 }
  0x1c   :  { %p576_p13 = por %p575_p12, %p574_p11 }
  0x1e   :  { %p577_p0 = pnand %p576_p13, %p570_p10 }
  0x20   :  { %580 = shalt.err (!%p577_p0)  }
  0x21   :  { %s593_s15 = smov [#allocation11]  }
  0x22   :  { %28 = dma.vmem_to_smem %s26_s13, 16, %s593_s15, [#allocation8] }
  0x23   :  { %585 = dma.done.wait [#allocation8], 48 }
  0x24   :  { %586 = vsyncadd [#allocation8], 4294967248 }
  0x25   :  { %30 = sfence }
  0x26   :  { %v594_v0 = vmov 0.0   ;;  %s670_s2 = smov 0  }
  0x27   :  { %49 = vst [vmem:[#allocation2] sm:$0xff] %v594_v0  ;;  %50 = vst [vmem:[#allocation2 + $0x8] sm:$0xff] %v594_v0 }
  0x28   :  { %51 = vst [vmem:[#allocation2 + $0x10] sm:$0xff] %v594_v0  ;;  %52 = vst [vmem:[#allocation2 + $0x18] sm:$0xff] %v594_v0 }
  0x29   :  { %53 = vst [vmem:[#allocation3] sm:$0xff] %v594_v0  ;;  %54 = vst [vmem:[#allocation3 + $0x8] sm:$0xff] %v594_v0 }
  0x2a   :  { %55 = vst [vmem:[#allocation3 + $0x10] sm:$0xff] %v594_v0  ;;  %56 = vst [vmem:[#allocation3 + $0x18] sm:$0xff] %v594_v0 }
  0x2b LB: > { %923 = sst [smem:[#allocation13_spill]] %s589_s2  ;;  %v595_v1 = vmov 0   ;;  %s676_s16 = sshll.u32 %s589_s2, 3  ;;  %s589_s2 = sphi %s670_s2, %s62_s2  }
  0x2c   : > { %542 = vset.pattern.permute.xlu0 %v595_v1  ;;  %s924_s3 = sld [smem:[#allocation14_spill]]  ;;  %s685_s22 = sadd.s32 1, %s676_s16 }
  0x2d   : > { %s64_s20 = sld [smem:[#allocation9 + %s676_s16]]  ;;  %s690_s25 = sadd.s32 2, %s676_s16 }
  0x2e   : > { %s65_s21 = sld [smem:[#allocation10 + %s676_s16]]  ;;  %s694_s27 = sadd.s32 3, %s676_s16 }
  0x2f   : > { %s66_s23 = sld [smem:[#allocation11 + %s676_s16]]  ;;  %s698_s29 = sadd.s32 4, %s676_s16 }
  0x30   : > { %s81_s24 = sld [smem:[#allocation9 + %s685_s22]] }
  0x31   : > { %s82_s26 = sld [smem:[#allocation10 + %s685_s22]] }
  0x32   : > { %s199_s19 = scalar_lea.vmem %s924_s3, %s676_s16  ;;  %s83_s28 = sld [smem:[#allocation11 + %s685_s22]] }
  0x33   : > { %v200_v2 = vld [vmem:[%s199_s19] sm:$0xff]  ;;  %s67_s30 = scalar_lea.vmem %s903_s4, %s64_s20  ;;  %s704_s13 = sld [smem:[#allocation9 + %s690_s25]] }
  0x34   : > { %206 = vperm.xlu0 %542, %v200_v2   ;;  %v68_v3 = vld [vmem:[%s67_s30] sm:$0x1]  ;;  %s73_s17 = scalar_lea.vmem %s904_s5, %s65_s21  ;;  %s710_s18 = sld [smem:[#allocation10 + %s690_s25]] }
  0x35   : > { %69 = vst [vmem:[#allocation4] sm:$0x1] %v68_v3  ;;  %s70_s12 = scalar_lea.vmem %s905_s6, %s66_s23  ;;  %v74_v4 = vld [vmem:[%s73_s17] sm:$0x1]  ;;  %s459_s20 = scalar_lea.vmem %s906_s7, %s66_s23 }
  0x36   : > { %v71_v5 = vld [vmem:[%s70_s12] sm:$0x1]  ;;  %75 = vst [vmem:[#allocation5] sm:$0x1] %v74_v4  ;;  %v520_v6 = vld [vmem:[%s459_s20 + $0x1] sm:$0x1]  ;;  %s84_s21 = scalar_lea.vmem %s903_s4, %s81_s24 }
  0x37   : > { %s100_s30 = sld [smem:[#allocation11 + %s690_s25]]  ;;  %72 = vst [vmem:[#allocation6] sm:$0x1] %v71_v5  ;;  %79 = vst [vmem:[#allocation7] sm:$0x1] %v520_v6  ;;  %s90_s10 = scalar_lea.vmem %s904_s5, %s82_s26 }
  0x38   : > { %v85_v7 = vld [vmem:[%s84_s21] sm:$0x1]  ;;  %s115_s11 = sld [smem:[#allocation9 + %s694_s27]]  ;;  %s87_s15 = scalar_lea.vmem %s905_s6, %s83_s28 }
  0x39   : > { %86 = vst [vmem:[#allocation4 + $0x1] sm:$0x1] %v85_v7  ;;  %v91_v8 = vld [vmem:[%s90_s10] sm:$0x1]  ;;  %s464_s19 = scalar_lea.vmem %s906_s7, %s83_s28  ;;  %s101_s26 = scalar_lea.vmem %s903_s4, %s704_s13 }
  0x3a   : > { %v88_v9 = vld [vmem:[%s87_s15] sm:$0x1]  ;;  %92 = vst [vmem:[#allocation5 + $0x1] sm:$0x1] %v91_v8  ;;  %v521_v10 = vld [vmem:[%s464_s19 + $0x1] sm:$0x1]  ;;  %s107_s14 = scalar_lea.vmem %s904_s5, %s710_s18 }
  0x3b   : > { %s116_s1 = sld [smem:[#allocation10 + %s694_s27]]  ;;  %89 = vst [vmem:[#allocation6 + $0x1] sm:$0x1] %v88_v9  ;;  %96 = vst [vmem:[#allocation7 + $0x1] sm:$0x1] %v521_v10  ;;  %s744_s12 = sadd.s32 5, %s676_s16 }
  0x3c   : > { %v102_v11 = vld [vmem:[%s101_s26] sm:$0x1]  ;;  %s117_s10 = sld [smem:[#allocation11 + %s694_s27]]  ;;  %s758_s3 = sadd.s32 6, %s676_s16 }
  0x3d   : > { %103 = vst [vmem:[#allocation4 + $0x2] sm:$0x1] %v102_v11  ;;  %v108_v12 = vld [vmem:[%s107_s14] sm:$0x1]  ;;  %s132_s28 = sld [smem:[#allocation9 + %s698_s29]]  ;;  %s104_s13 = scalar_lea.vmem %s905_s6, %s100_s30 }
  0x3e   : > { %109 = vst [vmem:[#allocation5 + $0x2] sm:$0x1] %v108_v12  ;;  %s469_s19 = scalar_lea.vmem %s906_s7, %s100_s30  ;;  %v105_v13 = vld [vmem:[%s104_s13] sm:$0x1]  ;;  %s118_s0 = scalar_lea.vmem %s903_s4, %s115_s11 }
  0x3f   : > { %v522_v14 = vld [vmem:[%s469_s19 + $0x1] sm:$0x1]  ;;  %s133_s26 = sld [smem:[#allocation10 + %s698_s29]]  ;;  %106 = vst [vmem:[#allocation6 + $0x2] sm:$0x1] %v105_v13  ;;  %s776_s23 = sadd.s32 7, %s676_s16 }
  0x40   : > { %113 = vst [vmem:[#allocation7 + $0x2] sm:$0x1] %v522_v14  ;;  %v119_v15 = vld [vmem:[%s118_s0] sm:$0x1]  ;;  %s134_s21 = sld [smem:[#allocation11 + %s698_s29]] }
  0x41   : > { %120 = vst [vmem:[#allocation4 + $0x3] sm:$0x1] %v119_v15  ;;  %s124_s30 = scalar_lea.vmem %s904_s5, %s116_s1  ;;  %s149_s15 = sld [smem:[#allocation9 + %s744_s12]] }
  0x42   : > { %s121_s11 = scalar_lea.vmem %s905_s6, %s117_s10  ;;  %v125_v16 = vld [vmem:[%s124_s30] sm:$0x1]  ;;  %s474_s18 = scalar_lea.vmem %s906_s7, %s117_s10 }
  0x43   : > { %v122_v17 = vld [vmem:[%s121_s11] sm:$0x1]  ;;  %126 = vst [vmem:[#allocation5 + $0x3] sm:$0x1] %v125_v16  ;;  %v523_v18 = vld [vmem:[%s474_s18 + $0x1] sm:$0x1]  ;;  %s135_s9 = scalar_lea.vmem %s903_s4, %s132_s28 }
  0x44   : > { %s150_s14 = sld [smem:[#allocation10 + %s744_s12]]  ;;  %123 = vst [vmem:[#allocation6 + $0x3] sm:$0x1] %v122_v17  ;;  %130 = vst [vmem:[#allocation7 + $0x3] sm:$0x1] %v523_v18 }
  0x45   : > { %v136_v19 = vld [vmem:[%s135_s9] sm:$0x1]  ;;  %s151_s1 = sld [smem:[#allocation11 + %s744_s12]]  ;;  %s141_s10 = scalar_lea.vmem %s904_s5, %s133_s26 }
  0x46   : > { %137 = vst [vmem:[#allocation4 + $0x4] sm:$0x1] %v136_v19  ;;  %s166_s24 = sld [smem:[#allocation9 + %s758_s3]]  ;;  %s138_s28 = scalar_lea.vmem %s905_s6, %s134_s21  ;;  %v142_v20 = vld [vmem:[%s141_s10] sm:$0x1] }
  0x47   : > { %s479_s9 = scalar_lea.vmem %s906_s7, %s134_s21  ;;  %v139_v21 = vld [vmem:[%s138_s28] sm:$0x1]  ;;  %143 = vst [vmem:[#allocation5 + $0x4] sm:$0x1] %v142_v20  ;;  %s152_s8 = scalar_lea.vmem %s903_s4, %s149_s15 }
  0x48   : > { %v524_v22 = vld [vmem:[%s479_s9 + $0x1] sm:$0x1]  ;;  %s167_s26 = sld [smem:[#allocation10 + %s758_s3]]  ;;  %140 = vst [vmem:[#allocation6 + $0x4] sm:$0x1] %v139_v21 }
  0x49   : > { %147 = vst [vmem:[#allocation7 + $0x4] sm:$0x1] %v524_v22  ;;  %v153_v23 = vld [vmem:[%s152_s8] sm:$0x1]  ;;  %s168_s30 = sld [smem:[#allocation11 + %s758_s3]] }
  0x4a   : > { %154 = vst [vmem:[#allocation4 + $0x5] sm:$0x1] %v153_v23  ;;  %s158_s11 = scalar_lea.vmem %s904_s5, %s150_s14  ;;  %s183_s21 = sld [smem:[#allocation9 + %s776_s23]] }
  0x4b   : > { %s155_s19 = scalar_lea.vmem %s905_s6, %s151_s1  ;;  %v159_v24 = vld [vmem:[%s158_s11] sm:$0x1]  ;;  %s484_s9 = scalar_lea.vmem %s906_s7, %s151_s1 }
  0x4c   : > { %v156_v25 = vld [vmem:[%s155_s19] sm:$0x1]  ;;  %160 = vst [vmem:[#allocation5 + $0x5] sm:$0x1] %v159_v24  ;;  %v525_v26 = vld [vmem:[%s484_s9 + $0x1] sm:$0x1]  ;;  %s169_s0 = scalar_lea.vmem %s903_s4, %s166_s24 }
  0x4d   : > { %s184_s2 = sld [smem:[#allocation10 + %s776_s23]]  ;;  %157 = vst [vmem:[#allocation6 + $0x5] sm:$0x1] %v156_v25  ;;  %164 = vst [vmem:[#allocation7 + $0x5] sm:$0x1] %v525_v26 }
  0x4e   : > { %v170_v27 = vld [vmem:[%s169_s0] sm:$0x1]  ;;  %s185_s14 = sld [smem:[#allocation11 + %s776_s23]]  ;;  %s175_s11 = scalar_lea.vmem %s904_s5, %s167_s26 }
  0x4f   : > { %171 = vst [vmem:[#allocation4 + $0x6] sm:$0x1] %v170_v27  ;;  %s172_s1 = scalar_lea.vmem %s905_s6, %s168_s30  ;;  %v176_v28 = vld [vmem:[%s175_s11] sm:$0x1]  ;;  %s489_s15 = scalar_lea.vmem %s906_s7, %s168_s30 }
  0x50   : > { %v173_v29 = vld [vmem:[%s172_s1] sm:$0x1]  ;;  %177 = vst [vmem:[#allocation5 + $0x6] sm:$0x1] %v176_v28  ;;  %v526_v30 = vld [vmem:[%s489_s15 + $0x1] sm:$0x1]  ;;  %s186_s8 = scalar_lea.vmem %s903_s4, %s183_s21 }
  0x51   : > { %174 = vst [vmem:[#allocation6 + $0x6] sm:$0x1] %v173_v29  ;;  %181 = vst [vmem:[#allocation7 + $0x6] sm:$0x1] %v526_v30  ;;  %v187_v31 = vld [vmem:[%s186_s8] sm:$0x1] }
  0x52   : > { %188 = vst [vmem:[#allocation4 + $0x7] sm:$0x1] %v187_v31  ;;  %s214_s21 = sld [smem:[#allocation9 + %s676_s16]] }
  0x53   : > { %s192_s0 = scalar_lea.vmem %s904_s5, %s184_s2  ;;  %s215_s1 = sld [smem:[#allocation10 + %s676_s16]] }
  0x54   : > { %s189_s30 = scalar_lea.vmem %s905_s6, %s185_s14  ;;  %v193_v32 = vld [vmem:[%s192_s0] sm:$0x1]  ;;  %s494_s28 = scalar_lea.vmem %s906_s7, %s185_s14 }
  0x55   : > { %v190_v33 = vld [vmem:[%s189_s30] sm:$0x1]  ;;  %194 = vst [vmem:[#allocation5 + $0x7] sm:$0x1] %v193_v32  ;;  %v527_v34 = vld [vmem:[%s494_s28 + $0x1] sm:$0x1] }
  0x56   : > { %191 = vst [vmem:[#allocation6 + $0x7] sm:$0x1] %v190_v33  ;;  %198 = vst [vmem:[#allocation7 + $0x7] sm:$0x1] %v527_v34  ;;  %s224_s19 = sld [smem:[#allocation9 + %s685_s22]] }
  0x57   : > { %s225_s18 = sld [smem:[#allocation10 + %s685_s22]] }
  0x58   : > { %s220_s14 = scalar_lea.vmem [#allocation3], %s214_s21  ;;  %s240_s16 = sld [smem:[#allocation9 + %s690_s25]] }
  0x59   : > { %v201_v35 = vld [vmem:[#allocation4] sm:$0xff]  ;;  %s216_s2 = scalar_lea.vmem [#allocation2], %s215_s1  ;;  %s241_s15 = sld [smem:[#allocation10 + %s690_s25]] }
  0x5a   : > { %v217_v42 = vld [vmem:[%s216_s2] sm:$0x1]  ;;  %s254_s22 = sld [smem:[#allocation9 + %s694_s27]] }
  0x5b   : > { %v221_v43 = vld [vmem:[%s220_s14] sm:$0x1]  ;;  %s255_s8 = sld [smem:[#allocation10 + %s694_s27]] }
  0x5c   : > { %v210_v37 = vld [vmem:[#allocation5] sm:$0xff]  ;;  %s233_s9 = scalar_lea.vmem [#allocation3], %s224_s19  ;;  %s268_s25 = sld [smem:[#allocation9 + %s698_s29]] }
  0x5d   : > { %v202_v36 = vld [vmem:[#allocation6] sm:$0xff]  ;;  %v211_v38 = vld [vmem:[#allocation7] sm:$0xff]  ;;  %s226_s24 = scalar_lea.vmem [#allocation2], %s225_s18  ;;  %s269_s0 = sld [smem:[#allocation10 + %s698_s29]] }
  0x5e   : > { %v203_v39 = vsub.f32 %v201_v35, %v202_v36  ;;  %v212_v40 = vsub.f32 %v210_v37, %v211_v38  ;;  %s248_s20 = scalar_lea.vmem [#allocation3], %s240_s16  ;;  %s282_s27 = sld [smem:[#allocation9 + %s744_s12]] }
  0x5f   : > { %s242_s26 = scalar_lea.vmem [#allocation2], %s241_s15  ;;  %s283_s30 = sld [smem:[#allocation10 + %s744_s12]] }
  0x60   : > { %s262_s10 = scalar_lea.vmem [#allocation3], %s254_s22  ;;  %s296_s29 = sld [smem:[#allocation9 + %s758_s3]] }
  0x61   : > { %s256_s13 = scalar_lea.vmem [#allocation2], %s255_s8  ;;  %s297_s28 = sld [smem:[#allocation10 + %s758_s3]] }
  0x62   : > { %s276_s17 = scalar_lea.vmem [#allocation3], %s268_s25  ;;  %s310_s12 = sld [smem:[#allocation9 + %s776_s23]] }
  0x63   : > { %s270_s11 = scalar_lea.vmem [#allocation2], %s269_s0 }
  0x64   : > { %s290_s1 = scalar_lea.vmem [#allocation3], %s282_s27 }
  0x65   : > { %s284_s21 = scalar_lea.vmem [#allocation2], %s283_s30 }
  0x66   : > { %s304_s19 = scalar_lea.vmem [#allocation3], %s296_s29 }
  0x68   : > { %s318_s18 = scalar_lea.vmem [#allocation3], %s310_s12 }
  0xaf   : > { %v207_v41 = vpop.permute.xlu0 %206 }
  0xb0   : > { %v832_v44 = vmul.f32 %v207_v41, %v203_v39  ;;  %v834_v45 = vmul.f32 %v212_v40, %v207_v41 }
  0xb2   : > { %v218_v46 = vadd.f32 %v217_v42, %v832_v44  ;;  %v222_v47 = vadd.f32 %v221_v43, %v834_v45  ;;  %v229_v48 = vrot.slane %v832_v44, 1  ;;  %v236_v49 = vrot.slane %v834_v45, 1 }
  0xb3   : > { %v244_v54 = vrot.slane %v832_v44, 2  ;;  %v250_v55 = vrot.slane %v834_v45, 2  ;;  %v258_v60 = vrot.slane %v832_v44, 3  ;;  %v264_v61 = vrot.slane %v834_v45, 3 }
  0xb4   : > { %219 = vst [vmem:[%s216_s2] sm:$0x1] %v218_v46  ;;  %223 = vst [vmem:[%s220_s14] sm:$0x1] %v222_v47  ;;  %v272_v2 = vrot.slane %v832_v44, 4  ;;  %v278_v3 = vrot.slane %v834_v45, 4  ;;  %v286_v8 = vrot.slane %v832_v44, 5  ;;  %v292_v9 = vrot.slane %v834_v45, 5 }
  0xb5   : > { %v300_v14 = vrot.slane %v832_v44, 6  ;;  %v306_v15 = vrot.slane %v834_v45, 6  ;;  %s311_s2 = sld [smem:[#allocation10 + %s776_s23]]  ;;  %s298_s14 = scalar_lea.vmem [#allocation2], %s297_s28  ;;  %v314_v20 = vrot.slane %v832_v44, 7  ;;  %v320_v21 = vrot.slane %v834_v45, 7 }
  0xb6   : > { %s925_s23 = sld [smem:[#allocation13_spill]] }
  0xbb   : > { %v227_v50 = vld [vmem:[%s226_s24] sm:$0x1]  ;;  %s312_s3 = scalar_lea.vmem [#allocation2], %s311_s2 }
  0xbc   : > { %v234_v51 = vld [vmem:[%s233_s9] sm:$0x1]  ;;  %v231_v52 = vadd.f32 %v229_v48, %v227_v50  ;;  %s62_s2 = sadd.s32 1, %s925_s23  }
  0xbd   : > { %v238_v53 = vadd.f32 %v236_v49, %v234_v51  ;;  %p59_p1 = scmp.ge.s32.totalorder %s62_s2, 3  }
  0xbe   : > { %232 = vst [vmem:[%s226_s24] sm:$0x1] %v231_v52  ;;  %s926_s24 = sld [smem:[#allocation15_spill]] (%p59_p1) }
  0xbf   : > { %239 = vst [vmem:[%s233_s9] sm:$0x1] %v238_v53  ;;  %s929_s30 = sld [smem:[#allocation18_spill]] (%p59_p1) }
  0xc0   :  { %s930_s29 = sld [smem:[#allocation19_spill]] (%p59_p1) }
  0xc4   :  { %v324_v26 = vld [vmem:[%s926_s24] sm:$0xff] (%p59_p1)  ;;  %v325_v30 = vld [vmem:[%s926_s24 + $0x8] sm:$0xff] (%p59_p1)  ;;  %v326_v34 = vld [vmem:[%s926_s24 + $0x10] sm:$0xff] (%p59_p1) }
  0xc5   : > { %v243_v56 = vld [vmem:[%s242_s26] sm:$0x1]  ;;  %v327_v39 = vld [vmem:[%s926_s24 + $0x18] sm:$0xff] (%p59_p1) }
  0xc6   : > { %v249_v57 = vld [vmem:[%s248_s20] sm:$0x1]  ;;  %v246_v58 = vadd.f32 %v244_v54, %v243_v56 }
  0xc7   : > { %v252_v59 = vadd.f32 %v250_v55, %v249_v57 }
  0xc8   : > { %247 = vst [vmem:[%s242_s26] sm:$0x1] %v246_v58 }
  0xc9   : > { %253 = vst [vmem:[%s248_s20] sm:$0x1] %v252_v59  ;;  %s927_s20 = sld [smem:[#allocation16_spill]] (%p59_p1) }
  0xcf   : > { %v257_v62 = vld [vmem:[%s256_s13] sm:$0x1] }
  0xd0   : > { %v263_v63 = vld [vmem:[%s262_s10] sm:$0x1]  ;;  %v260_v0 = vadd.f32 %v258_v60, %v257_v62 }
  0xd1   : > { %v266_v1 = vadd.f32 %v264_v61, %v263_v63  ;;  %v528_v41 = vld [vmem:[%s927_s20] ss:$0 sm:$0xff] (%p59_p1) }
  0xd2   : > { %261 = vst [vmem:[%s256_s13] sm:$0x1] %v260_v0  ;;  %s928_s13 = sld [smem:[#allocation17_spill]] (%p59_p1) }
  0xd3   : > { %267 = vst [vmem:[%s262_s10] sm:$0x1] %v266_v1 }
  0xd9   : > { %v271_v4 = vld [vmem:[%s270_s11] sm:$0x1] }
  0xda   : > { %v277_v5 = vld [vmem:[%s276_s17] sm:$0x1]  ;;  %v274_v6 = vadd.f32 %v272_v2, %v271_v4 }
  0xdb   : > { %v280_v7 = vadd.f32 %v278_v3, %v277_v5 }
  0xdc   : > { %275 = vst [vmem:[%s270_s11] sm:$0x1] %v274_v6 }
  0xdd   : > { %281 = vst [vmem:[%s276_s17] sm:$0x1] %v280_v7 }
  0xe3   : > { %v285_v10 = vld [vmem:[%s284_s21] sm:$0x1] }
  0xe4   : > { %v291_v11 = vld [vmem:[%s290_s1] sm:$0x1]  ;;  %v288_v12 = vadd.f32 %v286_v8, %v285_v10 }
  0xe5   : > { %v294_v13 = vadd.f32 %v292_v9, %v291_v11 }
  0xe6   : > { %289 = vst [vmem:[%s284_s21] sm:$0x1] %v288_v12 }
  0xe7   : > { %295 = vst [vmem:[%s290_s1] sm:$0x1] %v294_v13 }
  0xed   : > { %v299_v16 = vld [vmem:[%s298_s14] sm:$0x1] }
  0xee   : > { %v305_v17 = vld [vmem:[%s304_s19] sm:$0x1]  ;;  %v302_v18 = vadd.f32 %v300_v14, %v299_v16 }
  0xef   : > { %v308_v19 = vadd.f32 %v306_v15, %v305_v17 }
  0xf0   : > { %303 = vst [vmem:[%s298_s14] sm:$0x1] %v302_v18  ;;  %v429_v18 = vlaneseq (%p59_p1) }
  0xf1   : > { %309 = vst [vmem:[%s304_s19] sm:$0x1] %v308_v19 }
  0xf2   :  { %v430_v19 = vshrl.u32 (%p59_p1), %v429_v18, 7 }
  0xf7   : > { %v313_v22 = vld [vmem:[%s312_s3] sm:$0x1]  ;;  %61 = sbr.rel (!%p59_p1) target bundleno = 43 (0x2b), region = 112 }
  0xf8   : > { %v319_v23 = vld [vmem:[%s318_s18] sm:$0x1]  ;;  %v316_v24 = vadd.f32 %v314_v20, %v313_v22 }
  0xf9   : > { %v322_v25 = vadd.f32 %v320_v21, %v319_v23  ;;  %v417_v20 = vld [vmem:[%s928_s13] sm:$0x1] (%p59_p1)  ;;  %v431_v21 = vsub.s32 (%p59_p1), 0, %v430_v19 }
  0xfa   : > { %317 = vst [vmem:[%s312_s3] sm:$0x1] %v316_v24  ;;  %v421_v24 = vld [vmem:[%s929_s30] sm:$0x1] (%p59_p1) }
  0xfb   : > { %323 = vst [vmem:[%s318_s18] sm:$0x1] %v322_v25 }
 0x101   :  { %v328_v27 = vld [vmem:[#allocation2] sm:$0xff]  ;;  %v329_v31 = vld [vmem:[#allocation2 + $0x8] sm:$0xff]  ;;  %v330_v35 = vld [vmem:[#allocation2 + $0x10] sm:$0xff] }
 0x102   :  { %v336_v28 = vld [vmem:[#allocation3] sm:$0xff]  ;;  %v332_v29 = vadd.f32 %v328_v27, %v324_v26  ;;  %v333_v32 = vadd.f32 %v329_v31, %v325_v30  ;;  %v337_v33 = vld [vmem:[#allocation3 + $0x8] sm:$0xff]  ;;  %v334_v37 = vadd.f32 %v330_v35, %v326_v34  ;;  %v338_v38 = vld [vmem:[#allocation3 + $0x10] sm:$0xff] }
 0x103   :  { %v331_v40 = vld [vmem:[#allocation2 + $0x18] sm:$0xff] }
 0x104   :  { %v340_v36 = vadd.f32 %v336_v28, %v332_v29  ;;  %v341_v42 = vadd.f32 %v337_v33, %v333_v32  ;;  %v335_v43 = vadd.f32 %v331_v40, %v327_v39  ;;  %v339_v44 = vld [vmem:[#allocation3 + $0x18] sm:$0xff]  ;;  %v342_v46 = vadd.f32 %v338_v38, %v334_v37 }
 0x106   :  { %v344_v45 = vmul.f32 0.33333334, %v340_v36  ;;  %v345_v47 = vmul.f32 0.33333334, %v341_v42  ;;  %v343_v48 = vadd.f32 %v339_v44, %v335_v43  ;;  %v346_v50 = vmul.f32 0.33333334, %v342_v46 }
 0x108   :  { %v355_v49 = vadd.f32 %v528_v41, %v344_v45  ;;  %v356_v51 = vadd.f32 %v528_v41, %v345_v47  ;;  %v347_v52 = vmul.f32 0.33333334, %v343_v48  ;;  %v357_v54 = vadd.f32 %v528_v41, %v346_v50 }
 0x10a   :  { %v399_v53 = vmul.f32 %v355_v49, %v355_v49  ;;  %v389_v55 = vadd.f32 %v356_v51, %v355_v49  ;;  %v400_v56 = vmul.f32 %v356_v51, %v356_v51  ;;  %v358_v57 = vadd.f32 %v528_v41, %v347_v52 }
 0x10b   :  { %v401_v58 = vmul.f32 %v357_v54, %v357_v54 }
 0x10c   :  { %v403_v59 = vadd.f32 %v400_v56, %v399_v53  ;;  %v390_v60 = vadd.f32 %v389_v55, %v357_v54  ;;  %v402_v61 = vmul.f32 %v358_v57, %v358_v57 }
 0x10e   :  { %v404_v62 = vadd.f32 %v403_v59, %v401_v58  ;;  %v391_v63 = vadd.f32 %v390_v60, %v358_v57 }
 0x110   :  { %v392_v0 = vrot.slane %v391_v63, 4  ;;  %v405_v1 = vadd.f32 %v404_v62, %v402_v61 }
 0x112   :  { %v393_v2 = vadd.f32 %v392_v0, %v391_v63  ;;  %v406_v3 = vrot.slane %v405_v1, 4 }
 0x114   :  { %v394_v4 = vrot.slane %v393_v2, 2  ;;  %v407_v5 = vadd.f32 %v406_v3, %v405_v1 }
 0x116   :  { %v395_v6 = vadd.f32 %v394_v4, %v393_v2  ;;  %v408_v7 = vrot.slane %v407_v5, 2 }
 0x118   :  { %v396_v8 = vrot.slane %v395_v6, 1  ;;  %v409_v9 = vadd.f32 %v408_v7, %v407_v5 }
 0x11a   :  { %v397_v10 = vadd.f32 %v396_v8, %v395_v6  ;;  %v410_v11 = vrot.slane %v409_v9, 1 }
 0x11c   :  { %v411_v12 = vadd.f32 %v410_v11, %v409_v9  ;;  %v413_v13 = vmul.f32 0.03125, %v397_v10 }
 0x11e   :  { %v414_v14 = vmul.f32 0.03125, %v411_v12  ;;  %v415_v15 = vmul.f32 %v413_v13, %v413_v13 }
 0x120   :  { %v416_v16 = vsub.f32 %v414_v14, %v415_v15 }
 0x122   :  { %v418_v17 = vadd.f32 1e-05, %v416_v16 }
 0x124   :  { %543 = vrsqrt.f32 %v418_v17 }
 0x131   :  { %v544_v22 = vpop.eup %543 }
 0x132   :  { %v420_v23 = vmul.f32 %v544_v22, %v417_v20 }
 0x134   :  { %v422_v25 = vmul.f32 %v420_v23, %v413_v13  ;;  %v432_v26 = vrot.slane %v420_v23, %v431_v21 }
 0x136   :  { %v423_v27 = vsub.f32 %v421_v24, %v422_v25  ;;  %v434_v28 = vmul.f32 %v432_v26, %v355_v49  ;;  %v435_v29 = vmul.f32 %v432_v26, %v356_v51  ;;  %v436_v30 = vmul.f32 %v432_v26, %v357_v54 }
 0x137   :  { %v437_v31 = vmul.f32 %v432_v26, %v358_v57 }
 0x138   :  { %v442_v32 = vrot.slane %v423_v27, %v431_v21 }
 0x13a   :  { %v444_v33 = vadd.f32 %v442_v32, %v434_v28  ;;  %v445_v34 = vadd.f32 %v442_v32, %v435_v29  ;;  %v446_v35 = vadd.f32 %v442_v32, %v436_v30  ;;  %v447_v36 = vadd.f32 %v442_v32, %v437_v31 }
 0x13c   :  { %448 = vst [vmem:[%s930_s29] sm:$0xff] %v444_v33  ;;  %449 = vst [vmem:[%s930_s29 + $0x8] sm:$0xff] %v445_v34 }
 0x13d   :  { %450 = vst [vmem:[%s930_s29 + $0x10] sm:$0xff] %v446_v35  ;;  %451 = vst [vmem:[%s930_s29 + $0x18] sm:$0xff] %v447_v36 }

</bundles_post_ra>
